<compile_context>
chip_gen: v7x
topology: tpu7x:2x2x1
jax: 0.10.0
libtpu: 0.0.40
codegen_flags: <defaults>
</compile_context>

<pallas_src>
import functools

import numpy as np

import jax
import jax.numpy as jnp
from jax import lax
from jax.experimental import pallas as pl
from jax.experimental.pallas import tpu as pltpu


def _round_up(x, m):
    return (x + m - 1) // m * m


# ----------------------------------------------------------------------------
# Fused conv3x3(pad=1) + bias + ReLU kernel (single K = 9*Cin MXU matmul)
# ----------------------------------------------------------------------------
def _conv_kernel(x_ref, w_ref, b_ref, o_ref, xp_ref, slab_ref, *, w, pad, apply_relu):
    # x_ref:    (1, cin, hw)        HW-flattened NCHW image block
    # w_ref:    (cout, kp)          weight slab, column = (kh*3+kw)*cin + ci (zero padded)
    # b_ref:    (cout, 1)           bias
    # o_ref:    (1, cout, hw)       lane-dense output (HW on the lane axis)
    # xp_ref:   (cin, hw + 2*pad)   VMEM scratch: zero-padded flattened image
    # slab_ref: (kp, hw)            VMEM scratch: 9-tap im2col slab
    cin = x_ref.shape[1]
    hw = x_ref.shape[2]
    cdt = xp_ref.dtype

    # In-kernel zero padding of the flattened HW axis: the padded copy never
    # exists in HBM (saves a full activation read+write per conv).
    xp_ref[...] = jnp.zeros(xp_ref.shape, cdt)
    xp_ref[:, pl.ds(pad, hw)] = x_ref[0].astype(cdt)

    # Zero the tap slab (also covers the K-padding rows so no NaN garbage can
    # leak into the matmul).
    slab_ref[...] = jnp.zeros(slab_ref.shape, cdt)

    # Hoisted border-column masks: one (1, hw) iota, two compares, reused by
    # all six dw != 0 taps (broadcast happens inside jnp.where).
    col = lax.broadcasted_iota(jnp.int32, (1, hw), 1) % w
    not_left = col >= 1          # valid positions for a dw = -1 tap
    not_right = col <= w - 2     # valid positions for a dw = +1 tap

    # Build the (9*cin, hw) tap slab from static slices of the VMEM-resident
    # padded image.  The zero pad handles the vertical (dh) borders; only the
    # horizontal wrap-around columns need masking.
    t = 0
    for dh in (-1, 0, 1):
        for dw in (-1, 0, 1):
            xs = xp_ref[:, pl.ds(pad + dh * w + dw, hw)]        # (cin, hw)
            if dw == -1:
                xs = jnp.where(not_left, xs, jnp.zeros_like(xs))
            elif dw == 1:
                xs = jnp.where(not_right, xs, jnp.zeros_like(xs))
            slab_ref[pl.ds(t * cin, cin), :] = xs
            t += 1

    # One big MXU dot: (cout, 9*cin) @ (9*cin, hw) with f32 accumulation,
    # fused bias + ReLU epilogue on the VPU.
    acc = jnp.dot(w_ref[...], slab_ref[...], preferred_element_type=jnp.float32)
    acc = acc + b_ref[...]
    if apply_relu:
        acc = jnp.maximum(acc, 0.0)
    o_ref[0] = acc.astype(o_ref.dtype)


class Conv3x3BiasReLU:
    """Conv2d(Cin, Cout, 3, padding=1) + bias (+ ReLU), weights in OIHW.

    All call-invariant constants (weight slab, bias) are built once at init.
    """

    def __init__(self, weight, bias, apply_relu=True, compute_dtype=jnp.float32):
        cout, cin, kh, kw = weight.shape
        assert (kh, kw) == (3, 3)
        self.cin, self.cout = cin, cout
        self.apply_relu = apply_relu
        self.compute_dtype = compute_dtype
        k = 9 * cin
        self.kp = _round_up(k, 8)            # MXU-aligned contraction dim
        # (cout, 9*cin): column index = (kh*3 + kw)*cin + ci, matching the
        # slab build order in the kernel; zero-padded to kp columns.
        wslab = jnp.transpose(weight, (0, 2, 3, 1)).reshape(cout, k)
        wslab = jnp.pad(wslab, ((0, 0), (0, self.kp - k)))
        self.wslab = wslab.astype(compute_dtype)
        self.bias = bias.reshape(cout, 1).astype(jnp.float32)

    def __call__(self, x):
        n, cin, h, wd = x.shape
        assert cin == self.cin
        hw = h * wd
        pad = wd + 1                          # covers the +-(W+1) tap shifts
        cout, kp = self.cout, self.kp

        kern = functools.partial(
            _conv_kernel, w=wd, pad=pad, apply_relu=self.apply_relu)

        out = pl.pallas_call(
            kern,
            out_shape=jax.ShapeDtypeStruct((n, cout, hw), x.dtype),
            grid=(n,),
            in_specs=[
                pl.BlockSpec((1, cin, hw), lambda i: (i, 0, 0)),
                pl.BlockSpec((cout, kp), lambda i: (0, 0)),
                pl.BlockSpec((cout, 1), lambda i: (0, 0)),
            ],
            out_specs=pl.BlockSpec((1, cout, hw), lambda i: (i, 0, 0)),
            scratch_shapes=[
                pltpu.VMEM((cin, hw + 2 * pad), self.compute_dtype),
                pltpu.VMEM((kp, hw), self.compute_dtype),
            ],
            compiler_params=pltpu.CompilerParams(
                dimension_semantics=("parallel",)),
        )(x.reshape(n, cin, hw), self.wslab, self.bias)   # free reshape in

        return out.reshape(n, cout, h, wd)                # free reshape out


# ----------------------------------------------------------------------------
# MaxPool 2x2 kernel: row pairs via a free (N, C*Ho, 2W) view + VPU max,
# column pairs via two exact one-hot (W, W/2) MXU selectors + VPU max.
# ----------------------------------------------------------------------------
def _pool_kernel(x_ref, sel_ref, o_ref):
    # x_ref:   (1, C*Ho, 2W)   rows = (channel, output-row) pairs, lanes = two input rows
    # sel_ref: (2, W, Wo)      one-hot even/odd column selectors (f32, exact)
    # o_ref:   (1, C*Ho, Wo)
    w2 = x_ref.shape[2]
    w = w2 // 2
    xv = x_ref[0]                                         # (C*Ho, 2W)
    v = jnp.maximum(xv[:, :w], xv[:, w:])                 # vertical pair max (C*Ho, W)
    ev = jnp.dot(v, sel_ref[0], preferred_element_type=jnp.float32)   # even cols
    od = jnp.dot(v, sel_ref[1], preferred_element_type=jnp.float32)   # odd cols
    o_ref[0] = jnp.maximum(ev, od).astype(o_ref.dtype)


@functools.lru_cache(maxsize=None)
def _pool_col_selectors(w):
    wo = w // 2
    sel = np.zeros((2, w, wo), np.float32)
    j = np.arange(wo)
    sel[0, 2 * j, j] = 1.0
    sel[1, 2 * j + 1, j] = 1.0
    return jnp.asarray(sel)          # O(W^2) memory -> scales to real VGG sizes


def maxpool2x2(x):
    n, c, h, w = x.shape
    assert h % 2 == 0 and w % 2 == 0, "maxpool2x2 needs even spatial dims"
    ho, wo = h // 2, w // 2
    sel = _pool_col_selectors(w)
    x2 = x.reshape(n, c * ho, 2 * w)                      # free, row-pair view

    out = pl.pallas_call(
        _pool_kernel,
        out_shape=jax.ShapeDtypeStruct((n, c * ho, wo), x.dtype),
        grid=(n,),
        in_specs=[
            pl.BlockSpec((1, c * ho, 2 * w), lambda i: (i, 0, 0)),
            pl.BlockSpec((2, w, wo), lambda i: (0, 0, 0)),
        ],
        out_specs=pl.BlockSpec((1, c * ho, wo), lambda i: (i, 0, 0)),
        compiler_params=pltpu.CompilerParams(dimension_semantics=("parallel",)),
    )(x2, sel)
    return out.reshape(n, c, ho, wo)                      # free reshape


# ----------------------------------------------------------------------------
# FeatureExtractor: same forward semantics as the PyTorch module
# ----------------------------------------------------------------------------
class FeatureExtractor:
    def __init__(self, submodule, extracted_layers):
        # submodule: ordered list of (name, callable) -- mirrors nn.Module._modules
        self.submodule = submodule
        self.extracted_layers = extracted_layers

    def __call__(self, x):
        outputs = []
        for name, module in self.submodule:
            x = module(x)
            if name in self.extracted_layers:
                outputs += [x]
        return outputs


# ----------------------------------------------------------------------------
# Pure-JAX reference of the unfused 6-layer network (correctness check only)
# ----------------------------------------------------------------------------
def _ref_conv(x, w, b):
    y = lax.conv_general_dilated(x, w, (1, 1), ((1, 1), (1, 1)),
                                 dimension_numbers=("NCHW", "OIHW", "NCHW"))
    return y + b.reshape(1, -1, 1, 1)


def _ref_pool(x):
    n, c, h, w = x.shape
    return x.reshape(n, c, h // 2, 2, w // 2, 2).max(axis=(3, 5))


def _ref_forward(x, params, extracted):
    mods = [
        ("conv1", lambda t: _ref_conv(t, params["w1"], params["b1"])),
        ("relu1", lambda t: jnp.maximum(t, 0.0)),
        ("pool1", _ref_pool),
        ("conv2", lambda t: _ref_conv(t, params["w2"], params["b2"])),
        ("relu2", lambda t: jnp.maximum(t, 0.0)),
        ("pool2", _ref_pool),
    ]
    outs = []
    for name, fn in mods:
        x = fn(x)
        if name in extracted:
            outs.append(x)
    return outs


# ----------------------------------------------------------------------------
if __name__ == "__main__":
    key = jax.random.PRNGKey(0)
    kx, kw1, kb1, kw2, kb2 = jax.random.split(key, 5)

    # Small shapes: batch=2, channels=4, spatial=16 (NCHW).
    x = jax.random.normal(kx, (2, 4, 16, 16), dtype=jnp.float32)

    params = {
        "w1": 0.1 * jax.random.normal(kw1, (8, 4, 3, 3), dtype=jnp.float32),
        "b1": 0.1 * jax.random.normal(kb1, (8,), dtype=jnp.float32),
        "w2": 0.1 * jax.random.normal(kw2, (16, 8, 3, 3), dtype=jnp.float32),
        "b2": 0.1 * jax.random.normal(kb2, (16,), dtype=jnp.float32),
    }

    # Constants (weight slabs, biases, pool selectors) are hoisted to init.
    conv_relu1 = Conv3x3BiasReLU(params["w1"], params["b1"])
    conv_relu2 = Conv3x3BiasReLU(params["w2"], params["b2"])

    # "conv_relu1" output == relu1 activation of the original 6-layer stack.
    submodule = [
        ("conv_relu1", conv_relu1),
        ("pool1", maxpool2x2),
        ("conv_relu2", conv_relu2),
        ("pool2", maxpool2x2),
    ]
    extracted_layers = ["conv_relu1", "pool2"]

    extractor = FeatureExtractor(submodule, extracted_layers)

    # Whole forward under one jit: no per-layer dispatch, all reshapes/constant
    # plumbing folded, the four pallas_calls run back-to-back.
    forward = jax.jit(lambda inp: extractor(inp))

    outputs = forward(x)
    outputs = jax.block_until_ready(outputs)

    # Sanity check against the unfused pure-JAX reference (relu1 and pool2).
    refs = _ref_forward(x, params, ["relu1", "pool2"])
    assert len(outputs) == len(refs) == 2
    assert outputs[0].shape == (2, 8, 16, 16)
    assert outputs[1].shape == (2, 16, 4, 4)
    for got, want in zip(outputs, refs):
        assert got.shape == want.shape and got.dtype == want.dtype
        assert jnp.allclose(got, want, rtol=1e-4, atol=1e-4)

    print("KERNEL_OK")
</pallas_src>

<mosaic_0001>
module attributes {stable_mosaic.version = 11 : i64} {
  func.func @_conv_kernel(%arg0: i32, %arg1: memref<1x4x256xf32, #tpu.memory_space<vmem>>, %arg2: memref<8x40xf32, #tpu.memory_space<vmem>>, %arg3: memref<8x1xf32, #tpu.memory_space<vmem>>, %arg4: memref<1x8x256xf32, #tpu.memory_space<vmem>>, %arg5: memref<4x290xf32, #tpu.memory_space<vmem>>, %arg6: memref<40x256xf32, #tpu.memory_space<vmem>>) attributes {dimension_semantics = [#tpu.dimension_semantics<parallel>], iteration_bounds = array<i64: 2>, scalar_prefetch = 0 : i64, scratch_operands = 2 : i64, tpu.core_type = #tpu.core_type<tc>, window_params = [{transform_indices = @transform_0, window_bounds = array<i64: 1, 4, 256>}, {pipeline_mode = #tpu.pipeline_mode<synchronous>, transform_indices = @transform_1, window_bounds = array<i64: 8, 40>}, {pipeline_mode = #tpu.pipeline_mode<synchronous>, transform_indices = @transform_2, window_bounds = array<i64: 8, 1>}, {transform_indices = @transform_3, window_bounds = array<i64: 1, 8, 256>}]} {
    %cst = arith.constant 0.000000e+00 : f32
    %0 = vector.broadcast %cst : f32 to vector<4x290xf32>
    %c0 = arith.constant 0 : index
    %c0_0 = arith.constant 0 : index
    %1 = vector.load %arg5[%c0, %c0_0] : memref<4x290xf32, #tpu.memory_space<vmem>>, vector<4x290xf32>
    tpu.vector_store %arg5[%c0, %c0_0], %0 {strides = array<i32>} : memref<4x290xf32, #tpu.memory_space<vmem>>, vector<4x290xf32>,
    %c0_1 = arith.constant 0 : index
    %c0_2 = arith.constant 0 : index
    %c0_3 = arith.constant 0 : index
    %2 = vector.load %arg1[%c0_1, %c0_2, %c0_3] : memref<1x4x256xf32, #tpu.memory_space<vmem>>, vector<1x4x256xf32>
    %3 = vector.shape_cast %2 : vector<1x4x256xf32> to vector<4x256xf32>
    %c0_4 = arith.constant 0 : index
    %c17 = arith.constant 17 : index
    %4 = vector.load %arg5[%c0_4, %c17] : memref<4x290xf32, #tpu.memory_space<vmem>>, vector<4x256xf32>
    tpu.vector_store %arg5[%c0_4, %c17], %3 {strides = array<i32>} : memref<4x290xf32, #tpu.memory_space<vmem>>, vector<4x256xf32>,
    %cst_5 = arith.constant 0.000000e+00 : f32
    %5 = vector.broadcast %cst_5 : f32 to vector<40x256xf32>
    %c0_6 = arith.constant 0 : index
    %c0_7 = arith.constant 0 : index
    %6 = vector.load %arg6[%c0_6, %c0_7] : memref<40x256xf32, #tpu.memory_space<vmem>>, vector<40x256xf32>
    tpu.vector_store %arg6[%c0_6, %c0_7], %5 {strides = array<i32>} : memref<40x256xf32, #tpu.memory_space<vmem>>, vector<40x256xf32>,
    %7 = tpu.iota {dimensions = array<i32: 1>} : vector<1x256xi32>
    %c16_i32 = arith.constant 16 : i32
    %c0_i32 = arith.constant 0 : i32
    %8 = arith.cmpi eq, %c16_i32, %c0_i32 : i32
    %c1_i32 = arith.constant 1 : i32
    %9 = arith.select %8, %c1_i32, %c16_i32 : i32
    %10 = vector.broadcast %9 : i32 to vector<1x256xi32>
    %11 = arith.remsi %7, %10 : vector<1x256xi32>
    %c0_i32_8 = arith.constant 0 : i32
    %12 = vector.broadcast %c0_i32_8 : i32 to vector<1x256xi32>
    %13 = arith.cmpi ne, %11, %12 : vector<1x256xi32>
    %c0_i32_9 = arith.constant 0 : i32
    %14 = vector.broadcast %c0_i32_9 : i32 to vector<1x256xi32>
    %15 = arith.cmpi slt, %11, %14 : vector<1x256xi32>
    %c0_i32_10 = arith.constant 0 : i32
    %16 = arith.cmpi slt, %9, %c0_i32_10 : i32
    %17 = vector.broadcast %16 : i1 to vector<1x256xi1>
    %18 = vector.broadcast %17 : vector<1x256xi1> to vector<1x256xi1>
    %19 = arith.xori %15, %18 : vector<1x256xi1>
    %20 = arith.andi %19, %13 : vector<1x256xi1>
    %21 = vector.broadcast %9 : i32 to vector<1x256xi32>
    %22 = arith.addi %11, %21 : vector<1x256xi32>
    %23 = arith.select %20, %22, %11 : vector<1x256xi1>, vector<1x256xi32>
    %c1_i32_11 = arith.constant 1 : i32
    %24 = vector.broadcast %c1_i32_11 : i32 to vector<1x256xi32>
    %25 = arith.cmpi sge, %23, %24 : vector<1x256xi32>
    %c14_i32 = arith.constant 14 : i32
    %26 = vector.broadcast %c14_i32 : i32 to vector<1x256xi32>
    %27 = arith.cmpi sle, %23, %26 : vector<1x256xi32>
    %c0_12 = arith.constant 0 : index
    %c0_13 = arith.constant 0 : index
    %28 = vector.load %arg5[%c0_12, %c0_13] : memref<4x290xf32, #tpu.memory_space<vmem>>, vector<4x256xf32>
    %cst_14 = arith.constant 0.000000e+00 : f32
    %29 = vector.broadcast %cst_14 : f32 to vector<4x256xf32>
    %30 = vector.shape_cast %25 : vector<1x256xi1> to vector<1x256xi1>
    %31 = vector.broadcast %30 : vector<1x256xi1> to vector<4x256xi1>
    %32 = arith.select %31, %28, %29 : vector<4x256xi1>, vector<4x256xf32>
    %c0_15 = arith.constant 0 : index
    %c0_16 = arith.constant 0 : index
    %33 = vector.load %arg6[%c0_15, %c0_16] : memref<40x256xf32, #tpu.memory_space<vmem>>, vector<4x256xf32>
    tpu.vector_store %arg6[%c0_15, %c0_16], %32 {strides = array<i32>} : memref<40x256xf32, #tpu.memory_space<vmem>>, vector<4x256xf32>,
    %c0_17 = arith.constant 0 : index
    %c1 = arith.constant 1 : index
    %34 = vector.load %arg5[%c0_17, %c1] : memref<4x290xf32, #tpu.memory_space<vmem>>, vector<4x256xf32>
    %c4 = arith.constant 4 : index
    %c0_18 = arith.constant 0 : index
    %35 = vector.load %arg6[%c4, %c0_18] : memref<40x256xf32, #tpu.memory_space<vmem>>, vector<4x256xf32>
    tpu.vector_store %arg6[%c4, %c0_18], %34 {strides = array<i32>} : memref<40x256xf32, #tpu.memory_space<vmem>>, vector<4x256xf32>,
    %c0_19 = arith.constant 0 : index
    %c2 = arith.constant 2 : index
    %36 = vector.load %arg5[%c0_19, %c2] : memref<4x290xf32, #tpu.memory_space<vmem>>, vector<4x256xf32>
    %cst_20 = arith.constant 0.000000e+00 : f32
    %37 = vector.broadcast %cst_20 : f32 to vector<4x256xf32>
    %38 = vector.shape_cast %27 : vector<1x256xi1> to vector<1x256xi1>
    %39 = vector.broadcast %38 : vector<1x256xi1> to vector<4x256xi1>
    %40 = arith.select %39, %36, %37 : vector<4x256xi1>, vector<4x256xf32>
    %c8 = arith.constant 8 : index
    %c0_21 = arith.constant 0 : index
    %41 = vector.load %arg6[%c8, %c0_21] : memref<40x256xf32, #tpu.memory_space<vmem>>, vector<4x256xf32>
    tpu.vector_store %arg6[%c8, %c0_21], %40 {strides = array<i32>} : memref<40x256xf32, #tpu.memory_space<vmem>>, vector<4x256xf32>,
    %c0_22 = arith.constant 0 : index
    %c16 = arith.constant 16 : index
    %42 = vector.load %arg5[%c0_22, %c16] : memref<4x290xf32, #tpu.memory_space<vmem>>, vector<4x256xf32>
    %cst_23 = arith.constant 0.000000e+00 : f32
    %43 = vector.broadcast %cst_23 : f32 to vector<4x256xf32>
    %44 = vector.shape_cast %25 : vector<1x256xi1> to vector<1x256xi1>
    %45 = vector.broadcast %44 : vector<1x256xi1> to vector<4x256xi1>
    %46 = arith.select %45, %42, %43 : vector<4x256xi1>, vector<4x256xf32>
    %c12 = arith.constant 12 : index
    %c0_24 = arith.constant 0 : index
    %47 = vector.load %arg6[%c12, %c0_24] : memref<40x256xf32, #tpu.memory_space<vmem>>, vector<4x256xf32>
    tpu.vector_store %arg6[%c12, %c0_24], %46 {strides = array<i32>} : memref<40x256xf32, #tpu.memory_space<vmem>>, vector<4x256xf32>,
    %c0_25 = arith.constant 0 : index
    %c17_26 = arith.constant 17 : index
    %48 = vector.load %arg5[%c0_25, %c17_26] : memref<4x290xf32, #tpu.memory_space<vmem>>, vector<4x256xf32>
    %c16_27 = arith.constant 16 : index
    %c0_28 = arith.constant 0 : index
    %49 = vector.load %arg6[%c16_27, %c0_28] : memref<40x256xf32, #tpu.memory_space<vmem>>, vector<4x256xf32>
    tpu.vector_store %arg6[%c16_27, %c0_28], %48 {strides = array<i32>} : memref<40x256xf32, #tpu.memory_space<vmem>>, vector<4x256xf32>,
    %c0_29 = arith.constant 0 : index
    %c18 = arith.constant 18 : index
    %50 = vector.load %arg5[%c0_29, %c18] : memref<4x290xf32, #tpu.memory_space<vmem>>, vector<4x256xf32>
    %cst_30 = arith.constant 0.000000e+00 : f32
    %51 = vector.broadcast %cst_30 : f32 to vector<4x256xf32>
    %52 = vector.shape_cast %27 : vector<1x256xi1> to vector<1x256xi1>
    %53 = vector.broadcast %52 : vector<1x256xi1> to vector<4x256xi1>
    %54 = arith.select %53, %50, %51 : vector<4x256xi1>, vector<4x256xf32>
    %c20 = arith.constant 20 : index
    %c0_31 = arith.constant 0 : index
    %55 = vector.load %arg6[%c20, %c0_31] : memref<40x256xf32, #tpu.memory_space<vmem>>, vector<4x256xf32>
    tpu.vector_store %arg6[%c20, %c0_31], %54 {strides = array<i32>} : memref<40x256xf32, #tpu.memory_space<vmem>>, vector<4x256xf32>,
    %c0_32 = arith.constant 0 : index
    %c32 = arith.constant 32 : index
    %56 = vector.load %arg5[%c0_32, %c32] : memref<4x290xf32, #tpu.memory_space<vmem>>, vector<4x256xf32>
    %cst_33 = arith.constant 0.000000e+00 : f32
    %57 = vector.broadcast %cst_33 : f32 to vector<4x256xf32>
    %58 = vector.shape_cast %25 : vector<1x256xi1> to vector<1x256xi1>
    %59 = vector.broadcast %58 : vector<1x256xi1> to vector<4x256xi1>
    %60 = arith.select %59, %56, %57 : vector<4x256xi1>, vector<4x256xf32>
    %c24 = arith.constant 24 : index
    %c0_34 = arith.constant 0 : index
    %61 = vector.load %arg6[%c24, %c0_34] : memref<40x256xf32, #tpu.memory_space<vmem>>, vector<4x256xf32>
    tpu.vector_store %arg6[%c24, %c0_34], %60 {strides = array<i32>} : memref<40x256xf32, #tpu.memory_space<vmem>>, vector<4x256xf32>,
    %c0_35 = arith.constant 0 : index
    %c33 = arith.constant 33 : index
    %62 = vector.load %arg5[%c0_35, %c33] : memref<4x290xf32, #tpu.memory_space<vmem>>, vector<4x256xf32>
    %c28 = arith.constant 28 : index
    %c0_36 = arith.constant 0 : index
    %63 = vector.load %arg6[%c28, %c0_36] : memref<40x256xf32, #tpu.memory_space<vmem>>, vector<4x256xf32>
    tpu.vector_store %arg6[%c28, %c0_36], %62 {strides = array<i32>} : memref<40x256xf32, #tpu.memory_space<vmem>>, vector<4x256xf32>,
    %c0_37 = arith.constant 0 : index
    %c34 = arith.constant 34 : index
    %64 = vector.load %arg5[%c0_37, %c34] : memref<4x290xf32, #tpu.memory_space<vmem>>, vector<4x256xf32>
    %cst_38 = arith.constant 0.000000e+00 : f32
    %65 = vector.broadcast %cst_38 : f32 to vector<4x256xf32>
    %66 = vector.shape_cast %27 : vector<1x256xi1> to vector<1x256xi1>
    %67 = vector.broadcast %66 : vector<1x256xi1> to vector<4x256xi1>
    %68 = arith.select %67, %64, %65 : vector<4x256xi1>, vector<4x256xf32>
    %c32_39 = arith.constant 32 : index
    %c0_40 = arith.constant 0 : index
    %69 = vector.load %arg6[%c32_39, %c0_40] : memref<40x256xf32, #tpu.memory_space<vmem>>, vector<4x256xf32>
    tpu.vector_store %arg6[%c32_39, %c0_40], %68 {strides = array<i32>} : memref<40x256xf32, #tpu.memory_space<vmem>>, vector<4x256xf32>,
    %c0_41 = arith.constant 0 : index
    %c0_42 = arith.constant 0 : index
    %70 = vector.load %arg2[%c0_41, %c0_42] : memref<8x40xf32, #tpu.memory_space<vmem>>, vector<8x40xf32>
    %c0_43 = arith.constant 0 : index
    %c0_44 = arith.constant 0 : index
    %71 = vector.load %arg6[%c0_43, %c0_44] : memref<40x256xf32, #tpu.memory_space<vmem>>, vector<40x256xf32>
    %cst_45 = arith.constant dense<0.000000e+00> : vector<8x256xf32>
    %72 = tpu.matmul %70, %71, %cst_45 {dimension_numbers = #tpu.dot_dimension_numbers<[1], [0], [0], [1], [0, 0, 1, 1], [], []>} : vector<8x40xf32>, vector<40x256xf32>, vector<8x256xf32> -> vector<8x256xf32>
    %c0_46 = arith.constant 0 : index
    %c0_47 = arith.constant 0 : index
    %73 = vector.load %arg3[%c0_46, %c0_47] : memref<8x1xf32, #tpu.memory_space<vmem>>, vector<8x1xf32>
    %74 = vector.broadcast %73 : vector<8x1xf32> to vector<8x256xf32>
    %75 = arith.addf %72, %74 : vector<8x256xf32>
    %cst_48 = arith.constant 0.000000e+00 : f32
    %76 = vector.broadcast %cst_48 : f32 to vector<8x256xf32>
    %77 = arith.maximumf %75, %76 : vector<8x256xf32>
    %c0_49 = arith.constant 0 : index
    %c0_50 = arith.constant 0 : index
    %c0_51 = arith.constant 0 : index
    %78 = vector.load %arg4[%c0_49, %c0_50, %c0_51] : memref<1x8x256xf32, #tpu.memory_space<vmem>>, vector<1x8x256xf32>
    %79 = vector.shape_cast %78 : vector<1x8x256xf32> to vector<8x256xf32>
    %80 = vector.shape_cast %77 : vector<8x256xf32> to vector<1x8x256xf32>
    tpu.vector_store %arg4[%c0_49, %c0_50, %c0_51], %80 {strides = array<i32>} : memref<1x8x256xf32, #tpu.memory_space<vmem>>, vector<1x8x256xf32>,
    return
  }
  func.func @transform_0(%arg0: i32) -> (i32, i32, i32) {
    %c0_i32 = arith.constant 0 : i32
    %c0_i32_0 = arith.constant 0 : i32
    %c0_i32_1 = arith.constant 0 : i32
    return %arg0, %c0_i32, %c0_i32_0 : i32, i32, i32
  }
  func.func @transform_1(%arg0: i32) -> (i32, i32) {
    %c0_i32 = arith.constant 0 : i32
    %c0_i32_0 = arith.constant 0 : i32
    %c0_i32_1 = arith.constant 0 : i32
    return %c0_i32, %c0_i32_0 : i32, i32
  }
  func.func @transform_2(%arg0: i32) -> (i32, i32) {
    %c0_i32 = arith.constant 0 : i32
    %c0_i32_0 = arith.constant 0 : i32
    %c0_i32_1 = arith.constant 0 : i32
    return %c0_i32, %c0_i32_0 : i32, i32
  }
  func.func @transform_3(%arg0: i32) -> (i32, i32, i32) {
    %c0_i32 = arith.constant 0 : i32
    %c0_i32_0 = arith.constant 0 : i32
    %c0_i32_1 = arith.constant 0 : i32
    return %arg0, %c0_i32, %c0_i32_0 : i32, i32, i32
  }
}

module attributes {stable_mosaic.version = 11 : i64} {
  func.func @_pool_kernel(%arg0: i32, %arg1: memref<1x64x32xf32, #tpu.memory_space<vmem>>, %arg2: memref<2x16x8xf32, #tpu.memory_space<vmem>>, %arg3: memref<1x64x8xf32, #tpu.memory_space<vmem>>) attributes {dimension_semantics = [#tpu.dimension_semantics<parallel>], iteration_bounds = array<i64: 2>, scalar_prefetch = 0 : i64, scratch_operands = 0 : i64, tpu.core_type = #tpu.core_type<tc>, window_params = [{transform_indices = @transform_0, window_bounds = array<i64: 1, 64, 32>}, {pipeline_mode = #tpu.pipeline_mode<synchronous>, transform_indices = @transform_1, window_bounds = array<i64: 2, 16, 8>}, {transform_indices = @transform_2, window_bounds = array<i64: 1, 64, 8>}]} {
    %c0 = arith.constant 0 : index
    %c0_0 = arith.constant 0 : index
    %c0_1 = arith.constant 0 : index
    %0 = vector.load %arg1[%c0, %c0_0, %c0_1] : memref<1x64x32xf32, #tpu.memory_space<vmem>>, vector<1x64x32xf32>
    %1 = vector.shape_cast %0 : vector<1x64x32xf32> to vector<64x32xf32>
    %2 = vector.extract_strided_slice %1 {offsets = [0, 0], sizes = [64, 16], strides = [1, 1]} : vector<64x32xf32> to vector<64x16xf32>
    %3 = vector.extract_strided_slice %1 {offsets = [0, 16], sizes = [64, 16], strides = [1, 1]} : vector<64x32xf32> to vector<64x16xf32>
    %4 = arith.maximumf %2, %3 : vector<64x16xf32>
    %c0_2 = arith.constant 0 : index
    %c0_3 = arith.constant 0 : index
    %c0_4 = arith.constant 0 : index
    %5 = vector.load %arg2[%c0_2, %c0_3, %c0_4] : memref<2x16x8xf32, #tpu.memory_space<vmem>>, vector<1x16x8xf32>
    %6 = vector.shape_cast %5 : vector<1x16x8xf32> to vector<16x8xf32>
    %cst = arith.constant dense<0.000000e+00> : vector<64x8xf32>
    %7 = tpu.matmul %4, %6, %cst {dimension_numbers = #tpu.dot_dimension_numbers<[1], [0], [0], [1], [0, 0, 1, 1], [], []>} : vector<64x16xf32>, vector<16x8xf32>, vector<64x8xf32> -> vector<64x8xf32>
    %c1 = arith.constant 1 : index
    %c0_5 = arith.constant 0 : index
    %c0_6 = arith.constant 0 : index
    %8 = vector.load %arg2[%c1, %c0_5, %c0_6] : memref<2x16x8xf32, #tpu.memory_space<vmem>>, vector<1x16x8xf32>
    %9 = vector.shape_cast %8 : vector<1x16x8xf32> to vector<16x8xf32>
    %cst_7 = arith.constant dense<0.000000e+00> : vector<64x8xf32>
    %10 = tpu.matmul %4, %9, %cst_7 {dimension_numbers = #tpu.dot_dimension_numbers<[1], [0], [0], [1], [0, 0, 1, 1], [], []>} : vector<64x16xf32>, vector<16x8xf32>, vector<64x8xf32> -> vector<64x8xf32>
    %11 = arith.maximumf %7, %10 : vector<64x8xf32>
    %c0_8 = arith.constant 0 : index
    %c0_9 = arith.constant 0 : index
    %c0_10 = arith.constant 0 : index
    %12 = vector.load %arg3[%c0_8, %c0_9, %c0_10] : memref<1x64x8xf32, #tpu.memory_space<vmem>>, vector<1x64x8xf32>
    %13 = vector.shape_cast %12 : vector<1x64x8xf32> to vector<64x8xf32>
    %14 = vector.shape_cast %11 : vector<64x8xf32> to vector<1x64x8xf32>
    tpu.vector_store %arg3[%c0_8, %c0_9, %c0_10], %14 {strides = array<i32>} : memref<1x64x8xf32, #tpu.memory_space<vmem>>, vector<1x64x8xf32>,
    return
  }
  func.func @transform_0(%arg0: i32) -> (i32, i32, i32) {
    %c0_i32 = arith.constant 0 : i32
    %c0_i32_0 = arith.constant 0 : i32
    %c0_i32_1 = arith.constant 0 : i32
    return %arg0, %c0_i32, %c0_i32_0 : i32, i32, i32
  }
  func.func @transform_1(%arg0: i32) -> (i32, i32, i32) {
    %c0_i32 = arith.constant 0 : i32
    %c0_i32_0 = arith.constant 0 : i32
    %c0_i32_1 = arith.constant 0 : i32
    %c0_i32_2 = arith.constant 0 : i32
    return %c0_i32, %c0_i32_0, %c0_i32_1 : i32, i32, i32
  }
  func.func @transform_2(%arg0: i32) -> (i32, i32, i32) {
    %c0_i32 = arith.constant 0 : i32
    %c0_i32_0 = arith.constant 0 : i32
    %c0_i32_1 = arith.constant 0 : i32
    return %arg0, %c0_i32, %c0_i32_0 : i32, i32, i32
  }
}

module attributes {stable_mosaic.version = 11 : i64} {
  func.func @_conv_kernel(%arg0: i32, %arg1: memref<1x8x64xf32, #tpu.memory_space<vmem>>, %arg2: memref<16x72xf32, #tpu.memory_space<vmem>>, %arg3: memref<16x1xf32, #tpu.memory_space<vmem>>, %arg4: memref<1x16x64xf32, #tpu.memory_space<vmem>>, %arg5: memref<8x82xf32, #tpu.memory_space<vmem>>, %arg6: memref<72x64xf32, #tpu.memory_space<vmem>>) attributes {dimension_semantics = [#tpu.dimension_semantics<parallel>], iteration_bounds = array<i64: 2>, scalar_prefetch = 0 : i64, scratch_operands = 2 : i64, tpu.core_type = #tpu.core_type<tc>, window_params = [{transform_indices = @transform_0, window_bounds = array<i64: 1, 8, 64>}, {pipeline_mode = #tpu.pipeline_mode<synchronous>, transform_indices = @transform_1, window_bounds = array<i64: 16, 72>}, {pipeline_mode = #tpu.pipeline_mode<synchronous>, transform_indices = @transform_2, window_bounds = array<i64: 16, 1>}, {transform_indices = @transform_3, window_bounds = array<i64: 1, 16, 64>}]} {
    %cst = arith.constant 0.000000e+00 : f32
    %0 = vector.broadcast %cst : f32 to vector<8x82xf32>
    %c0 = arith.constant 0 : index
    %c0_0 = arith.constant 0 : index
    %1 = vector.load %arg5[%c0, %c0_0] : memref<8x82xf32, #tpu.memory_space<vmem>>, vector<8x82xf32>
    tpu.vector_store %arg5[%c0, %c0_0], %0 {strides = array<i32>} : memref<8x82xf32, #tpu.memory_space<vmem>>, vector<8x82xf32>,
    %c0_1 = arith.constant 0 : index
    %c0_2 = arith.constant 0 : index
    %c0_3 = arith.constant 0 : index
    %2 = vector.load %arg1[%c0_1, %c0_2, %c0_3] : memref<1x8x64xf32, #tpu.memory_space<vmem>>, vector<1x8x64xf32>
    %3 = vector.shape_cast %2 : vector<1x8x64xf32> to vector<8x64xf32>
    %c0_4 = arith.constant 0 : index
    %c9 = arith.constant 9 : index
    %4 = vector.load %arg5[%c0_4, %c9] : memref<8x82xf32, #tpu.memory_space<vmem>>, vector<8x64xf32>
    tpu.vector_store %arg5[%c0_4, %c9], %3 {strides = array<i32>} : memref<8x82xf32, #tpu.memory_space<vmem>>, vector<8x64xf32>,
    %cst_5 = arith.constant 0.000000e+00 : f32
    %5 = vector.broadcast %cst_5 : f32 to vector<72x64xf32>
    %c0_6 = arith.constant 0 : index
    %c0_7 = arith.constant 0 : index
    %6 = vector.load %arg6[%c0_6, %c0_7] : memref<72x64xf32, #tpu.memory_space<vmem>>, vector<72x64xf32>
    tpu.vector_store %arg6[%c0_6, %c0_7], %5 {strides = array<i32>} : memref<72x64xf32, #tpu.memory_space<vmem>>, vector<72x64xf32>,
    %7 = tpu.iota {dimensions = array<i32: 1>} : vector<1x64xi32>
    %c8_i32 = arith.constant 8 : i32
    %c0_i32 = arith.constant 0 : i32
    %8 = arith.cmpi eq, %c8_i32, %c0_i32 : i32
    %c1_i32 = arith.constant 1 : i32
    %9 = arith.select %8, %c1_i32, %c8_i32 : i32
    %10 = vector.broadcast %9 : i32 to vector<1x64xi32>
    %11 = arith.remsi %7, %10 : vector<1x64xi32>
    %c0_i32_8 = arith.constant 0 : i32
    %12 = vector.broadcast %c0_i32_8 : i32 to vector<1x64xi32>
    %13 = arith.cmpi ne, %11, %12 : vector<1x64xi32>
    %c0_i32_9 = arith.constant 0 : i32
    %14 = vector.broadcast %c0_i32_9 : i32 to vector<1x64xi32>
    %15 = arith.cmpi slt, %11, %14 : vector<1x64xi32>
    %c0_i32_10 = arith.constant 0 : i32
    %16 = arith.cmpi slt, %9, %c0_i32_10 : i32
    %17 = vector.broadcast %16 : i1 to vector<1x64xi1>
    %18 = vector.broadcast %17 : vector<1x64xi1> to vector<1x64xi1>
    %19 = arith.xori %15, %18 : vector<1x64xi1>
    %20 = arith.andi %19, %13 : vector<1x64xi1>
    %21 = vector.broadcast %9 : i32 to vector<1x64xi32>
    %22 = arith.addi %11, %21 : vector<1x64xi32>
    %23 = arith.select %20, %22, %11 : vector<1x64xi1>, vector<1x64xi32>
    %c1_i32_11 = arith.constant 1 : i32
    %24 = vector.broadcast %c1_i32_11 : i32 to vector<1x64xi32>
    %25 = arith.cmpi sge, %23, %24 : vector<1x64xi32>
    %c6_i32 = arith.constant 6 : i32
    %26 = vector.broadcast %c6_i32 : i32 to vector<1x64xi32>
    %27 = arith.cmpi sle, %23, %26 : vector<1x64xi32>
    %c0_12 = arith.constant 0 : index
    %c0_13 = arith.constant 0 : index
    %28 = vector.load %arg5[%c0_12, %c0_13] : memref<8x82xf32, #tpu.memory_space<vmem>>, vector<8x64xf32>
    %cst_14 = arith.constant 0.000000e+00 : f32
    %29 = vector.broadcast %cst_14 : f32 to vector<8x64xf32>
    %30 = vector.shape_cast %25 : vector<1x64xi1> to vector<1x64xi1>
    %31 = vector.broadcast %30 : vector<1x64xi1> to vector<8x64xi1>
    %32 = arith.select %31, %28, %29 : vector<8x64xi1>, vector<8x64xf32>
    %c0_15 = arith.constant 0 : index
    %c0_16 = arith.constant 0 : index
    %33 = vector.load %arg6[%c0_15, %c0_16] : memref<72x64xf32, #tpu.memory_space<vmem>>, vector<8x64xf32>
    tpu.vector_store %arg6[%c0_15, %c0_16], %32 {strides = array<i32>} : memref<72x64xf32, #tpu.memory_space<vmem>>, vector<8x64xf32>,
    %c0_17 = arith.constant 0 : index
    %c1 = arith.constant 1 : index
    %34 = vector.load %arg5[%c0_17, %c1] : memref<8x82xf32, #tpu.memory_space<vmem>>, vector<8x64xf32>
    %c8 = arith.constant 8 : index
    %c0_18 = arith.constant 0 : index
    %35 = vector.load %arg6[%c8, %c0_18] : memref<72x64xf32, #tpu.memory_space<vmem>>, vector<8x64xf32>
    tpu.vector_store %arg6[%c8, %c0_18], %34 {strides = array<i32>} : memref<72x64xf32, #tpu.memory_space<vmem>>, vector<8x64xf32>,
    %c0_19 = arith.constant 0 : index
    %c2 = arith.constant 2 : index
    %36 = vector.load %arg5[%c0_19, %c2] : memref<8x82xf32, #tpu.memory_space<vmem>>, vector<8x64xf32>
    %cst_20 = arith.constant 0.000000e+00 : f32
    %37 = vector.broadcast %cst_20 : f32 to vector<8x64xf32>
    %38 = vector.shape_cast %27 : vector<1x64xi1> to vector<1x64xi1>
    %39 = vector.broadcast %38 : vector<1x64xi1> to vector<8x64xi1>
    %40 = arith.select %39, %36, %37 : vector<8x64xi1>, vector<8x64xf32>
    %c16 = arith.constant 16 : index
    %c0_21 = arith.constant 0 : index
    %41 = vector.load %arg6[%c16, %c0_21] : memref<72x64xf32, #tpu.memory_space<vmem>>, vector<8x64xf32>
    tpu.vector_store %arg6[%c16, %c0_21], %40 {strides = array<i32>} : memref<72x64xf32, #tpu.memory_space<vmem>>, vector<8x64xf32>,
    %c0_22 = arith.constant 0 : index
    %c8_23 = arith.constant 8 : index
    %42 = vector.load %arg5[%c0_22, %c8_23] : memref<8x82xf32, #tpu.memory_space<vmem>>, vector<8x64xf32>
    %cst_24 = arith.constant 0.000000e+00 : f32
    %43 = vector.broadcast %cst_24 : f32 to vector<8x64xf32>
    %44 = vector.shape_cast %25 : vector<1x64xi1> to vector<1x64xi1>
    %45 = vector.broadcast %44 : vector<1x64xi1> to vector<8x64xi1>
    %46 = arith.select %45, %42, %43 : vector<8x64xi1>, vector<8x64xf32>
    %c24 = arith.constant 24 : index
    %c0_25 = arith.constant 0 : index
    %47 = vector.load %arg6[%c24, %c0_25] : memref<72x64xf32, #tpu.memory_space<vmem>>, vector<8x64xf32>
    tpu.vector_store %arg6[%c24, %c0_25], %46 {strides = array<i32>} : memref<72x64xf32, #tpu.memory_space<vmem>>, vector<8x64xf32>,
    %c0_26 = arith.constant 0 : index
    %c9_27 = arith.constant 9 : index
    %48 = vector.load %arg5[%c0_26, %c9_27] : memref<8x82xf32, #tpu.memory_space<vmem>>, vector<8x64xf32>
    %c32 = arith.constant 32 : index
    %c0_28 = arith.constant 0 : index
    %49 = vector.load %arg6[%c32, %c0_28] : memref<72x64xf32, #tpu.memory_space<vmem>>, vector<8x64xf32>
    tpu.vector_store %arg6[%c32, %c0_28], %48 {strides = array<i32>} : memref<72x64xf32, #tpu.memory_space<vmem>>, vector<8x64xf32>,
    %c0_29 = arith.constant 0 : index
    %c10 = arith.constant 10 : index
    %50 = vector.load %arg5[%c0_29, %c10] : memref<8x82xf32, #tpu.memory_space<vmem>>, vector<8x64xf32>
    %cst_30 = arith.constant 0.000000e+00 : f32
    %51 = vector.broadcast %cst_30 : f32 to vector<8x64xf32>
    %52 = vector.shape_cast %27 : vector<1x64xi1> to vector<1x64xi1>
    %53 = vector.broadcast %52 : vector<1x64xi1> to vector<8x64xi1>
    %54 = arith.select %53, %50, %51 : vector<8x64xi1>, vector<8x64xf32>
    %c40 = arith.constant 40 : index
    %c0_31 = arith.constant 0 : index
    %55 = vector.load %arg6[%c40, %c0_31] : memref<72x64xf32, #tpu.memory_space<vmem>>, vector<8x64xf32>
    tpu.vector_store %arg6[%c40, %c0_31], %54 {strides = array<i32>} : memref<72x64xf32, #tpu.memory_space<vmem>>, vector<8x64xf32>,
    %c0_32 = arith.constant 0 : index
    %c16_33 = arith.constant 16 : index
    %56 = vector.load %arg5[%c0_32, %c16_33] : memref<8x82xf32, #tpu.memory_space<vmem>>, vector<8x64xf32>
    %cst_34 = arith.constant 0.000000e+00 : f32
    %57 = vector.broadcast %cst_34 : f32 to vector<8x64xf32>
    %58 = vector.shape_cast %25 : vector<1x64xi1> to vector<1x64xi1>
    %59 = vector.broadcast %58 : vector<1x64xi1> to vector<8x64xi1>
    %60 = arith.select %59, %56, %57 : vector<8x64xi1>, vector<8x64xf32>
    %c48 = arith.constant 48 : index
    %c0_35 = arith.constant 0 : index
    %61 = vector.load %arg6[%c48, %c0_35] : memref<72x64xf32, #tpu.memory_space<vmem>>, vector<8x64xf32>
    tpu.vector_store %arg6[%c48, %c0_35], %60 {strides = array<i32>} : memref<72x64xf32, #tpu.memory_space<vmem>>, vector<8x64xf32>,
    %c0_36 = arith.constant 0 : index
    %c17 = arith.constant 17 : index
    %62 = vector.load %arg5[%c0_36, %c17] : memref<8x82xf32, #tpu.memory_space<vmem>>, vector<8x64xf32>
    %c56 = arith.constant 56 : index
    %c0_37 = arith.constant 0 : index
    %63 = vector.load %arg6[%c56, %c0_37] : memref<72x64xf32, #tpu.memory_space<vmem>>, vector<8x64xf32>
    tpu.vector_store %arg6[%c56, %c0_37], %62 {strides = array<i32>} : memref<72x64xf32, #tpu.memory_space<vmem>>, vector<8x64xf32>,
    %c0_38 = arith.constant 0 : index
    %c18 = arith.constant 18 : index
    %64 = vector.load %arg5[%c0_38, %c18] : memref<8x82xf32, #tpu.memory_space<vmem>>, vector<8x64xf32>
    %cst_39 = arith.constant 0.000000e+00 : f32
    %65 = vector.broadcast %cst_39 : f32 to vector<8x64xf32>
    %66 = vector.shape_cast %27 : vector<1x64xi1> to vector<1x64xi1>
    %67 = vector.broadcast %66 : vector<1x64xi1> to vector<8x64xi1>
    %68 = arith.select %67, %64, %65 : vector<8x64xi1>, vector<8x64xf32>
    %c64 = arith.constant 64 : index
    %c0_40 = arith.constant 0 : index
    %69 = vector.load %arg6[%c64, %c0_40] : memref<72x64xf32, #tpu.memory_space<vmem>>, vector<8x64xf32>
    tpu.vector_store %arg6[%c64, %c0_40], %68 {strides = array<i32>} : memref<72x64xf32, #tpu.memory_space<vmem>>, vector<8x64xf32>,
    %c0_41 = arith.constant 0 : index
    %c0_42 = arith.constant 0 : index
    %70 = vector.load %arg2[%c0_41, %c0_42] : memref<16x72xf32, #tpu.memory_space<vmem>>, vector<16x72xf32>
    %c0_43 = arith.constant 0 : index
    %c0_44 = arith.constant 0 : index
    %71 = vector.load %arg6[%c0_43, %c0_44] : memref<72x64xf32, #tpu.memory_space<vmem>>, vector<72x64xf32>
    %cst_45 = arith.constant dense<0.000000e+00> : vector<16x64xf32>
    %72 = tpu.matmul %70, %71, %cst_45 {dimension_numbers = #tpu.dot_dimension_numbers<[1], [0], [0], [1], [0, 0, 1, 1], [], []>} : vector<16x72xf32>, vector<72x64xf32>, vector<16x64xf32> -> vector<16x64xf32>
    %c0_46 = arith.constant 0 : index
    %c0_47 = arith.constant 0 : index
    %73 = vector.load %arg3[%c0_46, %c0_47] : memref<16x1xf32, #tpu.memory_space<vmem>>, vector<16x1xf32>
    %74 = vector.broadcast %73 : vector<16x1xf32> to vector<16x64xf32>
    %75 = arith.addf %72, %74 : vector<16x64xf32>
    %cst_48 = arith.constant 0.000000e+00 : f32
    %76 = vector.broadcast %cst_48 : f32 to vector<16x64xf32>
    %77 = arith.maximumf %75, %76 : vector<16x64xf32>
    %c0_49 = arith.constant 0 : index
    %c0_50 = arith.constant 0 : index
    %c0_51 = arith.constant 0 : index
    %78 = vector.load %arg4[%c0_49, %c0_50, %c0_51] : memref<1x16x64xf32, #tpu.memory_space<vmem>>, vector<1x16x64xf32>
    %79 = vector.shape_cast %78 : vector<1x16x64xf32> to vector<16x64xf32>
    %80 = vector.shape_cast %77 : vector<16x64xf32> to vector<1x16x64xf32>
    tpu.vector_store %arg4[%c0_49, %c0_50, %c0_51], %80 {strides = array<i32>} : memref<1x16x64xf32, #tpu.memory_space<vmem>>, vector<1x16x64xf32>,
    return
  }
  func.func @transform_0(%arg0: i32) -> (i32, i32, i32) {
    %c0_i32 = arith.constant 0 : i32
    %c0_i32_0 = arith.constant 0 : i32
    %c0_i32_1 = arith.constant 0 : i32
    return %arg0, %c0_i32, %c0_i32_0 : i32, i32, i32
  }
  func.func @transform_1(%arg0: i32) -> (i32, i32) {
    %c0_i32 = arith.constant 0 : i32
    %c0_i32_0 = arith.constant 0 : i32
    %c0_i32_1 = arith.constant 0 : i32
    return %c0_i32, %c0_i32_0 : i32, i32
  }
  func.func @transform_2(%arg0: i32) -> (i32, i32) {
    %c0_i32 = arith.constant 0 : i32
    %c0_i32_0 = arith.constant 0 : i32
    %c0_i32_1 = arith.constant 0 : i32
    return %c0_i32, %c0_i32_0 : i32, i32
  }
  func.func @transform_3(%arg0: i32) -> (i32, i32, i32) {
    %c0_i32 = arith.constant 0 : i32
    %c0_i32_0 = arith.constant 0 : i32
    %c0_i32_1 = arith.constant 0 : i32
    return %arg0, %c0_i32, %c0_i32_0 : i32, i32, i32
  }
}

module attributes {stable_mosaic.version = 11 : i64} {
  func.func @_pool_kernel(%arg0: i32, %arg1: memref<1x64x16xf32, #tpu.memory_space<vmem>>, %arg2: memref<2x8x4xf32, #tpu.memory_space<vmem>>, %arg3: memref<1x64x4xf32, #tpu.memory_space<vmem>>) attributes {dimension_semantics = [#tpu.dimension_semantics<parallel>], iteration_bounds = array<i64: 2>, scalar_prefetch = 0 : i64, scratch_operands = 0 : i64, tpu.core_type = #tpu.core_type<tc>, window_params = [{transform_indices = @transform_0, window_bounds = array<i64: 1, 64, 16>}, {pipeline_mode = #tpu.pipeline_mode<synchronous>, transform_indices = @transform_1, window_bounds = array<i64: 2, 8, 4>}, {transform_indices = @transform_2, window_bounds = array<i64: 1, 64, 4>}]} {
    %c0 = arith.constant 0 : index
    %c0_0 = arith.constant 0 : index
    %c0_1 = arith.constant 0 : index
    %0 = vector.load %arg1[%c0, %c0_0, %c0_1] : memref<1x64x16xf32, #tpu.memory_space<vmem>>, vector<1x64x16xf32>
    %1 = vector.shape_cast %0 : vector<1x64x16xf32> to vector<64x16xf32>
    %2 = vector.extract_strided_slice %1 {offsets = [0, 0], sizes = [64, 8], strides = [1, 1]} : vector<64x16xf32> to vector<64x8xf32>
    %3 = vector.extract_strided_slice %1 {offsets = [0, 8], sizes = [64, 8], strides = [1, 1]} : vector<64x16xf32> to vector<64x8xf32>
    %4 = arith.maximumf %2, %3 : vector<64x8xf32>
    %c0_2 = arith.constant 0 : index
    %c0_3 = arith.constant 0 : index
    %c0_4 = arith.constant 0 : index
    %5 = vector.load %arg2[%c0_2, %c0_3, %c0_4] : memref<2x8x4xf32, #tpu.memory_space<vmem>>, vector<1x8x4xf32>
    %6 = vector.shape_cast %5 : vector<1x8x4xf32> to vector<8x4xf32>
    %cst = arith.constant dense<0.000000e+00> : vector<64x4xf32>
    %7 = tpu.matmul %4, %6, %cst {dimension_numbers = #tpu.dot_dimension_numbers<[1], [0], [0], [1], [0, 0, 1, 1], [], []>} : vector<64x8xf32>, vector<8x4xf32>, vector<64x4xf32> -> vector<64x4xf32>
    %c1 = arith.constant 1 : index
    %c0_5 = arith.constant 0 : index
    %c0_6 = arith.constant 0 : index
    %8 = vector.load %arg2[%c1, %c0_5, %c0_6] : memref<2x8x4xf32, #tpu.memory_space<vmem>>, vector<1x8x4xf32>
    %9 = vector.shape_cast %8 : vector<1x8x4xf32> to vector<8x4xf32>
    %cst_7 = arith.constant dense<0.000000e+00> : vector<64x4xf32>
    %10 = tpu.matmul %4, %9, %cst_7 {dimension_numbers = #tpu.dot_dimension_numbers<[1], [0], [0], [1], [0, 0, 1, 1], [], []>} : vector<64x8xf32>, vector<8x4xf32>, vector<64x4xf32> -> vector<64x4xf32>
    %11 = arith.maximumf %7, %10 : vector<64x4xf32>
    %c0_8 = arith.constant 0 : index
    %c0_9 = arith.constant 0 : index
    %c0_10 = arith.constant 0 : index
    %12 = vector.load %arg3[%c0_8, %c0_9, %c0_10] : memref<1x64x4xf32, #tpu.memory_space<vmem>>, vector<1x64x4xf32>
    %13 = vector.shape_cast %12 : vector<1x64x4xf32> to vector<64x4xf32>
    %14 = vector.shape_cast %11 : vector<64x4xf32> to vector<1x64x4xf32>
    tpu.vector_store %arg3[%c0_8, %c0_9, %c0_10], %14 {strides = array<i32>} : memref<1x64x4xf32, #tpu.memory_space<vmem>>, vector<1x64x4xf32>,
    return
  }
  func.func @transform_0(%arg0: i32) -> (i32, i32, i32) {
    %c0_i32 = arith.constant 0 : i32
    %c0_i32_0 = arith.constant 0 : i32
    %c0_i32_1 = arith.constant 0 : i32
    return %arg0, %c0_i32, %c0_i32_0 : i32, i32, i32
  }
  func.func @transform_1(%arg0: i32) -> (i32, i32, i32) {
    %c0_i32 = arith.constant 0 : i32
    %c0_i32_0 = arith.constant 0 : i32
    %c0_i32_1 = arith.constant 0 : i32
    %c0_i32_2 = arith.constant 0 : i32
    return %c0_i32, %c0_i32_0, %c0_i32_1 : i32, i32, i32
  }
  func.func @transform_2(%arg0: i32) -> (i32, i32, i32) {
    %c0_i32 = arith.constant 0 : i32
    %c0_i32_0 = arith.constant 0 : i32
    %c0_i32_1 = arith.constant 0 : i32
    return %arg0, %c0_i32, %c0_i32_0 : i32, i32, i32
  }
}

</mosaic_0001>

<bundles_post_ra>
// kernel: _lambda_.6
= control target key start
LH: loop header
LB: loop body
LE: loop exit
PB: predicated region body
PF: predicated region fallthrough
CT: control target
= control target key end

     0   :  { %s548_s12 = smov 0   ;;  %s623_s0 = inlined_call_operand.vmem [shape: f32[2,8,64], index: 0, kind: input, shape index: {}]   ;;  %s624_s1 = inlined_call_operand.vmem [shape: f32[16,72], index: 1, kind: input, shape index: {}]   ;;  %s625_s2 = inlined_call_operand.vmem [shape: f32[16,1], index: 2, kind: input, shape index: {}]   ;;  %s626_s3 = inlined_call_operand.vmem [shape: f32[2,16,64], index: 3, kind: output, shape index: {}]  }
   0x1 LB: > { %s427_s13 = sadd.s32 4294967295, %s515_s12   ;;  %p431_p0 = scmp.ge.s32.totalorder %s515_s12, 1  ;;  %s515_s12 = sphi %s548_s12, %s13_s12  }
   0x2   : > { %p136_p1 = scmp.lt.s32.totalorder %s515_s12, 3 }
   0x4   : > { %p137_p2 = pnand %p431_p0, %p136_p1 }
   0x5   : > { %p159_p3 = scmp.lt.s32.totalorder (!%p137_p2), %s427_s13, 1  ;;  %vm168_vm0 = vcmask (!%p137_p2), 670720   ;;  %v517_v0 = vmov (!%p137_p2), 0.0   ;;  %vm177_vm1 = vcmask (!%p137_p2), 523264   ;;  %s518_s18 = smov (!%p137_p2), 9   ;;  %v187_v2 = vlaneseq (!%p137_p2)  ;;  %v263_v9 = vld [vmem:[%s624_s1] sm:$0xff] (!%p137_p2) }
   0x6   : > { %140 = sbr.rel (%p137_p2) target bundleno = 502 (0x1f6), region = 32  ;;  %169 = vst.msk [vmem:[#allocation2] sm:$0xff] (!%p137_p2), %vm168_vm0, %v517_v0  ;;  %vm175_vm2 = vcmask (!%p137_p2), 597064   ;;  %s519_s19 = smov (!%p137_p2), 126   ;;  %vm286_vm4 = vcmask (!%p137_p2), 588800   ;;  %v275_v10 = vld [vmem:[%s625_s2 + $0x8] sm:$0xff] (!%p137_p2) }
   0x7   : > { %180 = vst.msk [vmem:[#allocation3 + $0x10] sm:$0xff] (!%p137_p2), %vm177_vm1, %v517_v0  ;;  %178 = vst.msk [vmem:[#allocation3] sm:$0xff] (!%p137_p2), %vm177_vm1, %v517_v0  ;;  %v188_v3 = vand.u32 (!%p137_p2), 127, %v187_v2  ;;  %s520_s20 = smov (!%p137_p2), 127   ;;  %s521_s21 = smov (!%p137_p2), 120   ;;  %469 = vmatprep.mubr.msk.f32.mxu0 (!%p137_p2), %vm286_vm4, %v263_v9  ;;  %v274_v11 = vld [vmem:[%s625_s2] sm:$0xff] (!%p137_p2) }
   0x8   : > { %179 = vst.msk [vmem:[#allocation3 + $0x8] sm:$0xff] (!%p137_p2), %vm177_vm1, %v517_v0  ;;  %181 = vst.msk [vmem:[#allocation3 + $0x18] sm:$0xff] (!%p137_p2), %vm177_vm1, %v517_v0  ;;  %s522_s22 = smov (!%p137_p2), 118   ;;  %s523_s23 = smov (!%p137_p2), 119   ;;  %v527_v12 = vmov (!%p137_p2), 0   ;;  %v264_v40 = vld [vmem:[%s624_s1 + $0x8] sm:$0xff] (!%p137_p2) }
   0x9   : > { %182 = vst.msk [vmem:[#allocation3 + $0x20] sm:$0xff] (!%p137_p2), %vm177_vm1, %v517_v0  ;;  %183 = vst.msk [vmem:[#allocation3 + $0x28] sm:$0xff] (!%p137_p2), %vm177_vm1, %v517_v0  ;;  %v193_v5 = vand.u32 (!%p137_p2), 7, %v188_v3  ;;  %s524_s24 = smov (!%p137_p2), 112   ;;  %s525_s25 = smov (!%p137_p2), 111   ;;  %508 = vset.pattern.permute.xlu0 (!%p137_p2), %v527_v12  ;;  %507 = vset.pattern.permute.xlu1 (!%p137_p2), %v527_v12 }
   0xa   : > { %184 = vst.msk [vmem:[#allocation3 + $0x30] sm:$0xff] (!%p137_p2), %vm177_vm1, %v517_v0  ;;  %185 = vst.msk [vmem:[#allocation3 + $0x38] sm:$0xff] (!%p137_p2), %vm177_vm1, %v517_v0  ;;  %s526_s26 = smov (!%p137_p2), 110  }
   0xb   : > { %186 = vst.msk [vmem:[#allocation3 + $0x40] sm:$0xff] (!%p137_p2), %vm177_vm1, %v517_v0  ;;  %vm571_vm3 = vcmp.ge.s32.totalorder (!%p137_p2), %v193_v5, 1  ;;  %vm588_vm5 = vcmp.le.s32.totalorder (!%p137_p2), %v193_v5, 6 }
   0xd   : > { %s632_s13 = smov (!%p159_p3, %s427_s13), 1 }
   0xe   : > { %s432_s14 = sshll.u32 %s632_s13, 3  ;;  %s439_s8 = sshll.u32 %s632_s13, 4 }
   0xf   : > { %s162_s17 = scalar_lea.vmem %s623_s0, %s432_s14  ;;  %s167_s11 = scalar_lea.vmem %s626_s3, %s439_s8 }
  0x10   : > { %v170_v1 = vld [vmem:[%s162_s17] sm:$0xff] }
  0x11   : > { %172 = vrot.lane.b32.xlu0 %v170_v1, %s518_s18 }
  0x83   : > { %v173_v4 = vpop.permute.xlu0 %172 }
  0x84   : > { %176 = vst.msk [vmem:[#allocation2] sm:$0xff] %vm175_vm2, %v173_v4 }
  0x8b   : > { %v214_v7 = vld [vmem:[#allocation2] sm:$0xff] }
  0x8c   : > { %218 = vrot.lane.b32.xlu1 %v214_v7, %s519_s19  ;;  %210 = vrot.lane.b32.xlu0 %v214_v7, %s520_s20  ;;  %v206_v8 = vsel %vm571_vm3, %v214_v7, 0.0 }
  0x8d   : > { %207 = vst.msk [vmem:[#allocation3] sm:$0xff] %vm177_vm1, %v206_v8 }
  0x90   : > { %225 = vrot.lane.b32.xlu1 %v214_v7, %s521_s21  ;;  %238 = vrot.lane.b32.xlu0 %v214_v7, %s522_s22 }
  0x94   : > { %232 = vrot.lane.b32.xlu1 %v214_v7, %s523_s23  ;;  %245 = vrot.lane.b32.xlu0 %v214_v7, %s524_s24  ;;  %v265_v23 = vld [vmem:[#allocation3] sm:$0xff] }
  0x98   : > { %252 = vrot.lane.b32.xlu1 %v214_v7, %s525_s25  ;;  %258 = vrot.lane.b32.xlu0 %v214_v7, %s526_s26 }
  0x9c   : > { %283 = vperm.xlu0 %508, %v275_v10   ;;  %278 = vperm.xlu1 %507, %v274_v11  }
  0xfe   : > { %v219_v14 = vpop.permute.xlu1 %218  ;;  %v211_v15 = vpop.permute.xlu0 %210 }
  0xff   : > { %v221_v16 = vsel %vm588_vm5, %v219_v14, 0.0  ;;  %213 = vst.msk [vmem:[#allocation3 + $0x8] sm:$0xff] %vm177_vm1, %v211_v15 }
 0x100   : > { %222 = vst.msk [vmem:[#allocation3 + $0x10] sm:$0xff] %vm177_vm1, %v221_v16 }
 0x102   : > { %v226_v17 = vpop.permute.xlu1 %225  ;;  %v239_v18 = vpop.permute.xlu0 %238 }
 0x103   : > { %v228_v19 = vsel %vm571_vm3, %v226_v17, 0.0  ;;  %v241_v20 = vsel %vm588_vm5, %v239_v18, 0.0 }
 0x104   : > { %229 = vst.msk [vmem:[#allocation3 + $0x18] sm:$0xff] %vm177_vm1, %v228_v19  ;;  %242 = vst.msk [vmem:[#allocation3 + $0x28] sm:$0xff] %vm177_vm1, %v241_v20 }
 0x106   : > { %v233_v21 = vpop.permute.xlu1 %232  ;;  %v246_v22 = vpop.permute.xlu0 %245  ;;  %v266_v24 = vld [vmem:[#allocation3 + $0x8] sm:$0xff] }
 0x107   : > { %235 = vst.msk [vmem:[#allocation3 + $0x20] sm:$0xff] %vm177_vm1, %v233_v21  ;;  %v248_v25 = vsel %vm571_vm3, %v246_v22, 0.0  ;;  %v472_v26 = vpack.c.bf16 %v266_v24, %v265_v23  ;;  %v267_v30 = vld [vmem:[#allocation3 + $0x10] sm:$0xff] }
 0x108   : > { %249 = vst.msk [vmem:[#allocation3 + $0x30] sm:$0xff] %vm177_vm1, %v248_v25 }
 0x109   : > { %473 = vmatprep.subr.bf16.mxu0 %v472_v26 }
 0x10a   : > { %v253_v27 = vpop.permute.xlu1 %252  ;;  %v259_v28 = vpop.permute.xlu0 %258  ;;  %475 = vmatpush3.bf16.msra.mxu0 %v472_v26 }
 0x10b   : > { %255 = vst.msk [vmem:[#allocation3 + $0x38] sm:$0xff] %vm177_vm1, %v253_v27  ;;  %v261_v29 = vsel %vm588_vm5, %v259_v28, 0.0  ;;  %v268_v31 = vld [vmem:[#allocation3 + $0x18] sm:$0xff]  ;;  %v270_v34 = vld [vmem:[#allocation3 + $0x28] sm:$0xff] }
 0x10c   : > { %262 = vst.msk [vmem:[#allocation3 + $0x40] sm:$0xff] %vm177_vm1, %v261_v29  ;;  %v476_v32 = vpack.c.bf16 %v268_v31, %v267_v30 }
 0x10e   : > { %477 = vmatprep.subr.bf16.mxu0 %v476_v32  ;;  %v269_v33 = vld [vmem:[#allocation3 + $0x20] sm:$0xff] }
 0x10f   : > { %479 = vmatpush3.bf16.msra.mxu0 %v476_v32  ;;  %v480_v35 = vpack.c.bf16 %v270_v34, %v269_v33  ;;  %v271_v36 = vld [vmem:[#allocation3 + $0x30] sm:$0xff] }
 0x111   : > { %481 = vmatprep.subr.bf16.mxu0 %v480_v35 }
 0x112   : > { %v272_v37 = vld [vmem:[#allocation3 + $0x38] sm:$0xff] }
 0x113   : > { %483 = vmatpush3.bf16.msra.mxu0 %v480_v35  ;;  %v484_v38 = vpack.c.bf16 %v272_v37, %v271_v36  ;;  %v273_v39 = vld [vmem:[#allocation3 + $0x40] sm:$0xff] }
 0x115   : > { %485 = vmatprep.subr.bf16.mxu0 %v484_v38 }
 0x117   : > { %487 = vmatpush3.bf16.msra.mxu0 %v484_v38 }
 0x118   : > { %467 = vmatprep.subr.mxu0 %v273_v39 }
 0x11b   : > { %468 = vmatpush3.msra.mxu0 %v273_v39  ;;  %v284_v41 = vpop.permute.xlu0 %283  ;;  %v279_v42 = vpop.permute.xlu1 %278 }
 0x11c   : > { %470 = vmatmul.mubr.msk.f32.vlgmr.msra.gmra.mrb[0].mxu0 %vm286_vm4, %v264_v40 }
 0x1ef   : > { %v471_v43 = vpop.f32.mrb[0].mxu0 }
 0x1f0   : > { %v365_v44 = vadd.f32 %v471_v43, %v284_v41  ;;  %v359_v45 = vpop.f32.mrb[1].mxu0 }
 0x1f1   : > { %v360_v46 = vadd.f32 %v359_v45, %v279_v42 }
 0x1f2   : > { %v369_v47 = vmax.f32 %v365_v44, 0.0 }
 0x1f3   : > { %v368_v48 = vmax.f32 %v360_v46, 0.0 }
 0x1f4   : > { %371 = vst.msk [vmem:[%s167_s11 + $0x8] sm:$0xff] %vm177_vm1, %v369_v47 }
 0x1f5   : > { %370 = vst.msk [vmem:[%s167_s11] sm:$0xff] %vm177_vm1, %v368_v48 }
 0x1f6 PF: > { %s13_s12 = sadd.s32 1, %s515_s12  }
 0x1f7   : > { %p10_p4 = scmp.ge.s32.totalorder %s13_s12, 4  }
 0x1f9   :  { %12 = sbr.rel (!%p10_p4) target bundleno = 1 (0x1), region = 62 }

// kernel: _lambda_.4
= control target key start
LH: loop header
LB: loop body
LE: loop exit
PB: predicated region body
PF: predicated region fallthrough
CT: control target
= control target key end

     0   :  { %s651_s12 = smov 0   ;;  %s758_s0 = inlined_call_operand.vmem [shape: f32[2,4,256], index: 0, kind: input, shape index: {}]   ;;  %s759_s1 = inlined_call_operand.vmem [shape: f32[8,40], index: 1, kind: input, shape index: {}]   ;;  %s760_s2 = inlined_call_operand.vmem [shape: f32[8,1], index: 2, kind: input, shape index: {}]   ;;  %s761_s3 = inlined_call_operand.vmem [shape: f32[2,8,256], index: 3, kind: output, shape index: {}]  }
   0x1 LB: > { %s565_s13 = sadd.s32 4294967295, %s618_s12   ;;  %p569_p0 = scmp.ge.s32.totalorder %s618_s12, 1  ;;  %s618_s12 = sphi %s651_s12, %s13_s12  }
   0x2   : > { %p137_p1 = scmp.lt.s32.totalorder %s618_s12, 3 }
   0x4   : > { %p138_p2 = pnand %p569_p0, %p137_p1 }
   0x5   : > { %p659_p3 = scmp.lt.s32.totalorder (!%p138_p2), %s565_s13, 1  ;;  %vm172_vm0 = vcmask (!%p138_p2), 273408   ;;  %v620_v0 = vmov (!%p138_p2), 0.0   ;;  %s621_s19 = smov (!%p138_p2), 17   ;;  %v199_v2 = vlaneseq (!%p138_p2)  ;;  %vm183_vm1 = vcmask (!%p138_p2), 1043592   ;;  %v425_v26 = vld [vmem:[%s760_s2] sm:$0xff] (!%p138_p2) }
   0x6   : > { %141 = sbr.rel (%p138_p2) target bundleno = 532 (0x214), region = 32  ;;  %171 = vst [vmem:[#allocation2] sm:$0xff] (!%p138_p2), %v620_v0  ;;  %173 = vst.msk [vmem:[#allocation2 + $0x8] sm:$0xf] (!%p138_p2), %vm172_vm0, %v620_v0  ;;  %499 = vmatprep.mubr.f32.mxu0 (!%p138_p2), %v620_v0  ;;  %vm184_vm2 = vcmask (!%p138_p2), 1047556   ;;  %vm179_vm3 = vcmask (!%p138_p2), 138240  }
   0x7   : > { %189 = vst [vmem:[#allocation3] sm:$0xff] (!%p138_p2), %v620_v0  ;;  %190 = vst [vmem:[#allocation3 + $0x8] sm:$0xff] (!%p138_p2), %v620_v0  ;;  %v671_v3 = vand.u32 (!%p138_p2), 127, %v199_v2  ;;  %vm187_vm4 = vcmask (!%p138_p2), 134144   ;;  %s622_s20 = smov (!%p138_p2), 96   ;;  %s623_s21 = smov (!%p138_p2), 112  }
   0x8   : > { %191 = vst [vmem:[#allocation3 + $0x10] sm:$0xff] (!%p138_p2), %v620_v0  ;;  %192 = vst [vmem:[#allocation3 + $0x18] sm:$0xff] (!%p138_p2), %v620_v0  ;;  %s624_s22 = smov (!%p138_p2), 111   ;;  %s625_s23 = smov (!%p138_p2), 126   ;;  %v630_v25 = vmov (!%p138_p2), 0   ;;  %vm254_vm8 = vcmask (!%p138_p2), 1039360  }
   0x9   : > { %193 = vst [vmem:[#allocation3 + $0x20] sm:$0xff] (!%p138_p2), %v620_v0  ;;  %194 = vst [vmem:[#allocation3 + $0x28] sm:$0xff] (!%p138_p2), %v620_v0  ;;  %v674_v7 = vadd.s32 (!%p138_p2), 128, %v671_v3  ;;  %v206_v8 = vand.u32 (!%p138_p2), 15, %v671_v3  ;;  %s626_s24 = smov (!%p138_p2), 110   ;;  %s627_s25 = smov (!%p138_p2), 127   ;;  %606 = vset.pattern.permute.xlu1 (!%p138_p2), %v630_v25  ;;  %607 = vset.pattern.permute.xlu0 (!%p138_p2), %v630_v25 }
   0xa   : > { %195 = vst [vmem:[#allocation3 + $0x30] sm:$0xff] (!%p138_p2), %v620_v0  ;;  %196 = vst [vmem:[#allocation3 + $0x38] sm:$0xff] (!%p138_p2), %v620_v0  ;;  %s628_s26 = smov (!%p138_p2), 95   ;;  %s629_s27 = smov (!%p138_p2), 94   ;;  %vm387_vm9 = vcmask (!%p138_p2), 777216   ;;  %vm296_vm10 = vcmask (!%p138_p2), 916480  }
   0xb   : > { %197 = vst [vmem:[#allocation3 + $0x40] sm:$0xff] (!%p138_p2), %v620_v0  ;;  %198 = vst [vmem:[#allocation3 + $0x48] sm:$0xff] (!%p138_p2), %v620_v0  ;;  %v213_v9 = vand.u32 (!%p138_p2), 15, %v674_v7  ;;  %vm680_vm6 = vcmp.ge.s32.totalorder (!%p138_p2), %v206_v8, 1  ;;  %vm276_vm11 = vcmask (!%p138_p2), 1031168   ;;  %vm716_vm12 = vcmp.le.s32.totalorder (!%p138_p2), %v206_v8, 14 }
   0xc   : > { %vm185_vm5 = vmor (!%p138_p2), %vm184_vm2, %vm183_vm1  ;;  %vm340_vm14 = vcmask (!%p138_p2), 900096   ;;  %vm366_vm15 = vcmask (!%p138_p2), 785408   ;;  %vm322_vm0 = vcmask (!%p138_p2), 908288   ;;  %vm405_vm1 = vcmask (!%p138_p2), 769024  }
   0xd   : > { %s772_s13 = smov (!%p659_p3, %s565_s13), 1  ;;  %vm688_vm7 = vcmp.ge.s32.totalorder %v213_v9, 1  ;;  %vm722_vm13 = vcmp.le.s32.totalorder %v213_v9, 14  ;;  %vm431_vm2 = vcmask 326656  }
   0xe   : > { %s577_s15 = sshll.u32 %s772_s13, 3  ;;  %s578_s5 = sshll.u32 %s772_s13, 4 }
   0xf   : > { %s165_s18 = scalar_lea.vmem %s758_s0, %s577_s15  ;;  %s170_s8 = scalar_lea.vmem %s761_s3, %s578_s5 }
  0x10   : > { %v174_v1 = vld [vmem:[%s165_s18] sm:$0xff] }
  0x11   : > { %176 = vrot.lane.b32.xlu0 %v174_v1, %s621_s19 }
  0x83   : > { %v177_v4 = vpop.permute.xlu0 %176 }
  0x84   : > { %v178_v5 = vrot.slane %v177_v4, 4 }
  0x86   : > { %v180_v6 = vsel %vm179_vm3, %v178_v5, %v177_v4  ;;  %188 = vst.msk [vmem:[#allocation2 + $0x8] sm:$0xf] %vm187_vm4, %v178_v5 }
  0x87   : > { %186 = vst.msk [vmem:[#allocation2] sm:$0xff] %vm185_vm5, %v180_v6 }
  0x8d   : > { %v356_v10 = vld [vmem:[#allocation2 + $0x8] sm:$0xf] }
  0x8e   : > { %v286_v11 = vld [vmem:[#allocation2 + $0x8] sm:$0xf]  ;;  %364 = vrot.lane.b32.xlu0 %v356_v10, %s622_s20  ;;  %v242_v13 = vld [vmem:[#allocation2] sm:$0xff] }
  0x8f   : > { %294 = vrot.lane.b32.xlu1 %v286_v11, %s623_s21  ;;  %v289_v15 = vcombine.high %v242_v13, %v242_v13  ;;  %v238_v16 = vsel %vm680_vm6, %v242_v13, 0.0  ;;  %v312_v17 = vld [vmem:[#allocation2 + $0x8] sm:$0xf]  ;;  %v246_v23 = vcombine.low %v242_v13, %v242_v13 }
  0x90   : > { %v262_v18 = vld [vmem:[#allocation2 + $0x8] sm:$0xf]  ;;  %240 = vst [vmem:[#allocation3] sm:$0xf] %v238_v16 }
  0x91   : > { %v239_v19 = vsel %vm688_vm7, %v289_v15, 0.0  ;;  %v330_v20 = vld [vmem:[#allocation2 + $0x8] sm:$0xf] }
  0x92   : > { %320 = vrot.lane.b32.xlu0 %v312_v17, %s624_s22  ;;  %241 = vst [vmem:[#allocation3 + $0x8] sm:$0xf] %v239_v19  ;;  %v610_v21 = vld [vmem:[#allocation2 + $0x8] ss:$0 sps:$4 sm:$0xff]  }
  0x93   : > { %274 = vrot.lane.b32.xlu1 %v262_v18, %s625_s23  ;;  %v611_v22 = vld [vmem:[#allocation2 + $0x8] ss:$0 sps:$4 sm:$0xff]  }
  0x94   : > { %v395_v24 = vld [vmem:[#allocation2 + $0x8] sm:$0xf] }
  0x96   : > { %250 = vrot.lane.b32.xlu0 %v242_v13, %s627_s25 }
  0x97   : > { %338 = vrot.lane.b32.xlu1 %v330_v20, %s626_s24 }
  0x9a   : > { %270 = vrot.lane.b32.xlu0 %v242_v13, %s625_s23 }
  0x9b   : > { %290 = vrot.lane.b32.xlu1 %v242_v13, %s623_s21 }
  0x9e   : > { %334 = vrot.lane.b32.xlu0 %v242_v13, %s626_s24 }
  0x9f   : > { %360 = vrot.lane.b32.xlu1 %v242_v13, %s622_s20 }
  0xa2   : > { %383 = vrot.lane.b32.xlu0 %v242_v13, %s628_s26 }
  0xa3   : > { %252 = vrot.lane.b32.xlu1 %v610_v21, %s627_s25 }
  0xa6   : > { %292 = vrot.lane.b32.xlu0 %v289_v15, %s623_s21 }
  0xa7   : > { %385 = vrot.lane.b32.xlu1 %v611_v22, %s628_s26 }
  0xaa   : > { %272 = vrot.lane.b32.xlu0 %v289_v15, %s625_s23 }
  0xab   : > { %248 = vrot.lane.b32.xlu1 %v246_v23, %s627_s25 }
  0xae   : > { %336 = vrot.lane.b32.xlu0 %v289_v15, %s626_s24 }
  0xaf   : > { %362 = vrot.lane.b32.xlu1 %v289_v15, %s622_s20 }
  0xb2   : > { %316 = vrot.lane.b32.xlu0 %v242_v13, %s624_s22 }
  0xb3   : > { %318 = vrot.lane.b32.xlu1 %v289_v15, %s624_s22 }
  0xb6   : > { %401 = vrot.lane.b32.xlu0 %v289_v15, %s629_s27 }
  0xb7   : > { %381 = vrot.lane.b32.xlu1 %v246_v23, %s628_s26 }
  0xba   : > { %399 = vrot.lane.b32.xlu0 %v242_v13, %s629_s27 }
  0xbb   : > { %403 = vrot.lane.b32.xlu1 %v395_v24, %s629_s27 }
  0xbf   : > { %428 = vperm.xlu1 %606, %v425_v26  }
 0x100   : > { %v365_v27 = vpop.permute.xlu0 %364 }
 0x101   : > { %v295_v28 = vpop.permute.xlu1 %294 }
 0x104   : > { %v703_v29 = vpop.permute.xlu0 %320 }
 0x105   : > { %v275_v30 = vpop.permute.xlu1 %274 }
 0x108   : > { %v251_v32 = vpop.permute.xlu0 %250 }
 0x109   : > { %v339_v31 = vpop.permute.xlu1 %338 }
 0x10c   : > { %v271_v34 = vpop.permute.xlu0 %270 }
 0x10d   : > { %v291_v33 = vpop.permute.xlu1 %290 }
 0x110   : > { %v335_v36 = vpop.permute.xlu0 %334 }
 0x111   : > { %v361_v35 = vpop.permute.xlu1 %360 }
 0x114   : > { %v705_v38 = vpop.permute.xlu0 %383 }
 0x115   : > { %v253_v37 = vpop.permute.xlu1 %252 }
 0x116   : > { %v256_v39 = vsel %vm254_vm8, %v251_v32, %v253_v37 }
 0x117   : > { %260 = vst [vmem:[#allocation3 + $0x8] sm:$0xf0] %v256_v39 }
 0x118   : > { %v293_v41 = vpop.permute.xlu0 %292 }
 0x119   : > { %v386_v40 = vpop.permute.xlu1 %385  ;;  %v297_v43 = vsel %vm296_vm10, %v291_v33, %v293_v41  ;;  %v298_v44 = vsel %vm296_vm10, %v293_v41, %v295_v28  ;;  %v414_v33 = vld [vmem:[%s759_s1] sm:$0xff] }
 0x11a   : > { %v389_v42 = vsel %vm387_vm9, %v705_v38, %v386_v40  ;;  %v301_v45 = vsel %vm680_vm6, %v297_v43, 0.0  ;;  %v302_v46 = vsel %vm688_vm7, %v298_v44, 0.0 }
 0x11b   : > { %393 = vst [vmem:[#allocation3 + $0x38] sm:$0xf0] %v389_v42  ;;  %v305_v47 = vrot.slane %v301_v45, 4  ;;  %v306_v48 = vrot.slane %v302_v46, 4 }
 0x11c   : > { %v273_v51 = vpop.permute.xlu0 %272 }
 0x11d   : > { %v249_v52 = vpop.permute.xlu1 %248  ;;  %309 = vst [vmem:[#allocation3 + $0x10] sm:$0xf0] %v305_v47  ;;  %310 = vst [vmem:[#allocation3 + $0x18] sm:$0xf0] %v306_v48  ;;  %v277_v53 = vsel %vm276_vm11, %v271_v34, %v273_v51  ;;  %v278_v54 = vsel %vm276_vm11, %v273_v51, %v275_v30 }
 0x11e   : > { %v255_v55 = vsel %vm254_vm8, %v249_v52, %v251_v32  ;;  %v281_v56 = vsel %vm716_vm12, %v277_v53, 0.0  ;;  %v282_v57 = vsel %vm722_vm13, %v278_v54, 0.0  ;;  %v416_v11 = vld [vmem:[#allocation3 + $0x8] sm:$0xff] }
 0x11f   : > { %259 = vst [vmem:[#allocation3] sm:$0xf0] %v255_v55  ;;  %283 = vst [vmem:[#allocation3 + $0x10] sm:$0xf] %v281_v56 }
 0x120   : > { %284 = vst [vmem:[#allocation3 + $0x18] sm:$0xf] %v282_v57  ;;  %v337_v58 = vpop.permute.xlu0 %336 }
 0x121   : > { %v363_v59 = vpop.permute.xlu1 %362  ;;  %v341_v60 = vsel %vm340_vm14, %v335_v36, %v337_v58  ;;  %v342_v61 = vsel %vm340_vm14, %v337_v58, %v339_v31 }
 0x122   : > { %v367_v62 = vsel %vm366_vm15, %v361_v35, %v363_v59  ;;  %v368_v63 = vsel %vm366_vm15, %v363_v59, %v365_v27  ;;  %v345_v0 = vsel %vm716_vm12, %v341_v60, 0.0  ;;  %v346_v1 = vsel %vm722_vm13, %v342_v61, 0.0 }
 0x123   : > { %v371_v2 = vsel %vm680_vm6, %v367_v62, 0.0  ;;  %v372_v3 = vsel %vm688_vm7, %v368_v63, 0.0  ;;  %v349_v4 = vrot.slane %v345_v0, 4  ;;  %v350_v5 = vrot.slane %v346_v1, 4 }
 0x124   : > { %373 = vst [vmem:[#allocation3 + $0x30] sm:$0xf] %v371_v2  ;;  %374 = vst [vmem:[#allocation3 + $0x38] sm:$0xf] %v372_v3  ;;  %v317_v6 = vpop.permute.xlu0 %316 }
 0x125   : > { %v319_v7 = vpop.permute.xlu1 %318  ;;  %353 = vst [vmem:[#allocation3 + $0x20] sm:$0xf0] %v349_v4  ;;  %354 = vst [vmem:[#allocation3 + $0x28] sm:$0xf0] %v350_v5 }
 0x126   : > { %v323_v8 = vsel %vm322_vm0, %v317_v6, %v319_v7  ;;  %v324_v9 = vsel %vm322_vm0, %v319_v7, %v703_v29  ;;  %v415_v10 = vld [vmem:[#allocation3] sm:$0xff]  ;;  %v417_v13 = vld [vmem:[#allocation3 + $0x10] sm:$0xff] }
 0x127   : > { %327 = vst [vmem:[#allocation3 + $0x20] sm:$0xf] %v323_v8  ;;  %328 = vst [vmem:[#allocation3 + $0x28] sm:$0xf] %v324_v9  ;;  %v418_v12 = vld [vmem:[#allocation3 + $0x18] sm:$0xff]  ;;  %v581_v15 = vpack.c.bf16 %v417_v13, %v415_v10 }
 0x128   : > { %v579_v14 = vpack.c.bf16 %v418_v12, %v416_v11  ;;  %v402_v16 = vpop.permute.xlu0 %401 }
 0x129   : > { %v382_v17 = vpop.permute.xlu1 %381 }
 0x12a   : > { %v388_v18 = vsel %vm387_vm9, %v382_v17, %v705_v38  ;;  %580 = vmatprep.subr.bf16.mxu0 %v579_v14 }
 0x12b   : > { %392 = vst [vmem:[#allocation3 + $0x30] sm:$0xf0] %v388_v18  ;;  %582 = vmatpush1.bf16.msra.mxu0 %v581_v15  ;;  %v422_v24 = vld [vmem:[#allocation3 + $0x38] sm:$0xff] }
 0x12c   : > { %v400_v19 = vpop.permute.xlu0 %399 }
 0x12d   : > { %v404_v20 = vpop.permute.xlu1 %403  ;;  %v406_v21 = vsel %vm405_vm1, %v400_v19, %v402_v16 }
 0x12e   : > { %v407_v22 = vsel %vm405_vm1, %v402_v16, %v404_v20  ;;  %v420_v23 = vld [vmem:[#allocation3 + $0x28] sm:$0xff]  ;;  %v410_v25 = vsel %vm716_vm12, %v406_v21, 0.0  ;;  %v419_v28 = vld [vmem:[#allocation3 + $0x20] sm:$0xff] }
 0x12f   : > { %v411_v26 = vsel %vm722_vm13, %v407_v22, 0.0  ;;  %v583_v27 = vpack.c.bf16 %v422_v24, %v420_v23  ;;  %412 = vst [vmem:[#allocation3 + $0x40] sm:$0xf] %v410_v25 }
 0x130   : > { %413 = vst [vmem:[#allocation3 + $0x48] sm:$0xf] %v411_v26 }
 0x131   : > { %584 = vmatprep.subr.bf16.mxu0 %v583_v27 }
 0x132   : > { %v421_v29 = vld [vmem:[#allocation3 + $0x30] sm:$0xff] }
 0x133   : > { %v585_v30 = vpack.c.bf16 %v421_v29, %v419_v28 }
 0x135   : > { %586 = vmatpush1.bf16.msra.mxu0 %v585_v30 }
 0x136   : > { %v423_v32 = vld [vmem:[#allocation3 + $0x40] sm:$0xff] }
 0x137   : > { %v424_v31 = vld [vmem:[#allocation3 + $0x48] sm:$0xff] }
 0x138   : > { %443 = vmatprep.subr.mxu0 %v424_v31 }
 0x139   : > { %444 = vmatpush1.msra.mxu0 %v423_v32 }
 0x13a   : > { %574 = vmatmul.mubr.msk.f32.vlgmr.msra.gmra.mrb[0].mxu0 %vm431_vm2, %v414_v33 }
 0x13e   : > { %v429_v34 = vpop.permute.xlu1 %428 }
 0x20d   : > { %v501_v35 = vpop.f32.mrb[0].mxu0 }
 0x20e   : > { %v502_v36 = vadd.f32 %v501_v35, %v429_v34  ;;  %v503_v37 = vpop.f32.mrb[1].mxu0 }
 0x20f   : > { %v504_v38 = vadd.f32 %v503_v37, %v429_v34 }
 0x210   : > { %v506_v39 = vmax.f32 %v502_v36, 0.0 }
 0x211   : > { %v507_v40 = vmax.f32 %v504_v38, 0.0 }
 0x212   : > { %508 = vst [vmem:[%s170_s8] sm:$0xff] %v506_v39 }
 0x213   : > { %509 = vst [vmem:[%s170_s8 + $0x8] sm:$0xff] %v507_v40 }
 0x214 PF: > { %s13_s12 = sadd.s32 1, %s618_s12  }
 0x215   : > { %p10_p4 = scmp.ge.s32.totalorder %s13_s12, 4  }
 0x217   :  { %12 = sbr.rel (!%p10_p4) target bundleno = 1 (0x1), region = 62 }

// kernel: _lambda_.5
= control target key start
LH: loop header
LB: loop body
LE: loop exit
PB: predicated region body
PF: predicated region fallthrough
CT: control target
= control target key end

     0   :  { %s628_s9 = smov 0   ;;  %s698_s0 = inlined_call_operand.vmem [shape: f32[2,64,32], index: 0, kind: input, shape index: {}]   ;;  %s699_s1 = inlined_call_operand.vmem [shape: f32[2,16,8], index: 1, kind: input, shape index: {}]   ;;  %s700_s2 = inlined_call_operand.vmem [shape: f32[2,64,8], index: 2, kind: output, shape index: {}]  }
   0x1 LB: > { %s504_s10 = sadd.s32 4294967295, %s610_s9   ;;  %p508_p0 = scmp.ge.s32.totalorder %s610_s9, 1  ;;  %s610_s9 = sphi %s628_s9, %s12_s9  }
   0x2   : > { %p112_p1 = scmp.lt.s32.totalorder %s610_s9, 3 }
   0x4   : > { %p113_p2 = pnand %p508_p0, %p112_p1 }
   0x5   : > { %p134_p3 = scmp.lt.s32.totalorder (!%p113_p2), %s504_s10, 1  ;;  %v192_v0 = vld [vmem:[%s699_s1] sm:$0xff] (!%p113_p2)  ;;  %v193_v1 = vld [vmem:[%s699_s1 + $0x8] sm:$0xff] (!%p113_p2)  ;;  %v521_v2 = vld [vmem:[%s699_s1 + $0x10] sm:$0xff] (!%p113_p2)  ;;  %s612_s23 = smov (!%p113_p2), 112   ;;  %vm194_vm0 = vcmask (!%p113_p2), 130048  }
   0x6   : > { %116 = sbr.rel (%p113_p2) target bundleno = 366 (0x16e), region = 28  ;;  %v587_v3 = vpack.c.bf16 (!%p113_p2), %v193_v1, %v192_v0  ;;  %v522_v4 = vld [vmem:[%s699_s1 + $0x18] sm:$0xff] (!%p113_p2)  ;;  %vm440_vm1 = vcmask (!%p113_p2), 64512  }
   0x7   : > { %v591_v5 = vpack.c.bf16 (!%p113_p2), %v522_v4, %v521_v2 }
   0x8   : > { %588 = vmatprep.subr.bf16.mxu0 (!%p113_p2), %v587_v3 }
   0x9   : > { %592 = vmatprep.subr.bf16.mxu1 (!%p113_p2), %v591_v5  ;;  %590 = vmatpush3.bf16.msra.mxu0 (!%p113_p2), %v587_v3 }
   0xa   : > { %594 = vmatpush3.bf16.msra.mxu1 (!%p113_p2), %v591_v5 }
   0xd   : > { %s702_s10 = smov (!%p134_p3, %s504_s10), 1 }
   0xe   : > { %s533_s19 = sshll.u32 %s702_s10, 6 }
   0xf   : > { %s138_s22 = scalar_lea.vmem %s698_s0, %s533_s19  ;;  %s677_s26 = scalar_lea.vmem %s700_s2, %s533_s19 }
  0x10   : > { %v144_v6 = vld [vmem:[%s138_s22] sm:$0xff]  ;;  %v146_v7 = vld [vmem:[%s138_s22 + $0x10] sm:$0xff]  ;;  %v145_v8 = vld [vmem:[%s138_s22 + $0x8] sm:$0xff] }
  0x11   : > { %160 = vrot.lane.b32.xlu0 %v144_v6, %s612_s23  ;;  %164 = vrot.lane.b32.xlu1 %v146_v7, %s612_s23  ;;  %v147_v9 = vld [vmem:[%s138_s22 + $0x18] sm:$0xff]  ;;  %v148_v10 = vld [vmem:[%s138_s22 + $0x20] sm:$0xff] }
  0x12   : > { %v149_v11 = vld [vmem:[%s138_s22 + $0x28] sm:$0xff]  ;;  %v150_v12 = vld [vmem:[%s138_s22 + $0x30] sm:$0xff]  ;;  %v151_v13 = vld [vmem:[%s138_s22 + $0x38] sm:$0xff] }
  0x15   : > { %162 = vrot.lane.b32.xlu0 %v145_v8, %s612_s23  ;;  %166 = vrot.lane.b32.xlu1 %v147_v9, %s612_s23 }
  0x19   : > { %168 = vrot.lane.b32.xlu0 %v148_v10, %s612_s23  ;;  %170 = vrot.lane.b32.xlu1 %v149_v11, %s612_s23 }
  0x1d   : > { %172 = vrot.lane.b32.xlu0 %v150_v12, %s612_s23  ;;  %174 = vrot.lane.b32.xlu1 %v151_v13, %s612_s23 }
  0x83   : > { %v161_v14 = vpop.permute.xlu0 %160  ;;  %v165_v15 = vpop.permute.xlu1 %164 }
  0x84   : > { %v184_v16 = vmax.f32 %v144_v6, %v161_v14  ;;  %v186_v17 = vmax.f32 %v146_v7, %v165_v15 }
  0x86   : > { %559 = vmatprep.mubr.msk.f32.mxu0 %vm194_vm0, %v184_v16  ;;  %575 = vmatprep.mubr.msk.f32.mxu1 %vm194_vm0, %v184_v16 }
  0x87   : > { %v163_v18 = vpop.permute.xlu0 %162  ;;  %v167_v19 = vpop.permute.xlu1 %166 }
  0x88   : > { %v185_v20 = vmax.f32 %v145_v8, %v163_v18  ;;  %v187_v21 = vmax.f32 %v147_v9, %v167_v19 }
  0x8a   : > { %560 = vmatmul.mubr.msk.f32.vlgmr.msra.gmra.mrb[0].mxu0 %vm194_vm0, %v185_v20  ;;  %576 = vmatmul.mubr.msk.f32.vlgmr.msra.gmra.mrb[0].mxu1 %vm194_vm0, %v185_v20 }
  0x8b   : > { %562 = vmatprep.mubr.msk.f32.mxu0 %vm194_vm0, %v186_v17  ;;  %578 = vmatprep.mubr.msk.f32.mxu1 %vm194_vm0, %v186_v17  ;;  %v169_v22 = vpop.permute.xlu0 %168  ;;  %v171_v23 = vpop.permute.xlu1 %170 }
  0x8c   : > { %v188_v24 = vmax.f32 %v148_v10, %v169_v22  ;;  %v189_v25 = vmax.f32 %v149_v11, %v171_v23 }
  0x8e   : > { %563 = vmatmul.mubr.msk.f32.gmra.mrb[2].mxu0 %vm194_vm0, %v187_v21  ;;  %579 = vmatmul.mubr.msk.f32.gmra.mrb[2].mxu1 %vm194_vm0, %v187_v21 }
  0x8f   : > { %565 = vmatprep.mubr.msk.f32.mxu0 %vm194_vm0, %v188_v24  ;;  %581 = vmatprep.mubr.msk.f32.mxu1 %vm194_vm0, %v188_v24  ;;  %v173_v26 = vpop.permute.xlu0 %172  ;;  %v175_v27 = vpop.permute.xlu1 %174 }
  0x90   : > { %v190_v28 = vmax.f32 %v150_v12, %v173_v26  ;;  %v191_v29 = vmax.f32 %v151_v13, %v175_v27 }
  0x92   : > { %566 = vmatmul.mubr.msk.f32.gmra.mrb[4].mxu0 %vm194_vm0, %v189_v25  ;;  %582 = vmatmul.mubr.msk.f32.gmra.mrb[4].mxu1 %vm194_vm0, %v189_v25 }
  0x93   : > { %568 = vmatprep.mubr.msk.f32.mxu0 %vm194_vm0, %v190_v28  ;;  %584 = vmatprep.mubr.msk.f32.mxu1 %vm194_vm0, %v190_v28 }
  0x96   : > { %569 = vmatmul.mubr.msk.f32.gmra.mrb[6].mxu0 %vm194_vm0, %v191_v29  ;;  %585 = vmatmul.mubr.msk.f32.gmra.mrb[6].mxu1 %vm194_vm0, %v191_v29 }
 0x15d   : > { %v561_v30 = vpop.f32.mrb[0].mxu0  ;;  %v577_v31 = vpop.f32.mrb[0].mxu1 }
 0x15e   : > { %v433_v32 = vmax.f32 %v561_v30, %v577_v31  ;;  %v285_v33 = vpop.f32.mrb[1].mxu0  ;;  %v393_v34 = vpop.f32.mrb[1].mxu1 }
 0x15f   : > { %v432_v35 = vmax.f32 %v285_v33, %v393_v34 }
 0x160   : > { %442 = vst.msk [vmem:[%s677_s26 + $0x8] sm:$0xff] %vm440_vm1, %v433_v32 }
 0x161   : > { %441 = vst.msk [vmem:[%s677_s26] sm:$0xff] %vm440_vm1, %v432_v35  ;;  %v564_v36 = vpop.f32.mrb[2].mxu0  ;;  %v580_v37 = vpop.f32.mrb[2].mxu1 }
 0x162   : > { %v435_v38 = vmax.f32 %v564_v36, %v580_v37  ;;  %v295_v39 = vpop.f32.mrb[3].mxu0  ;;  %v403_v40 = vpop.f32.mrb[3].mxu1 }
 0x163   : > { %v434_v41 = vmax.f32 %v295_v39, %v403_v40 }
 0x164   : > { %444 = vst.msk [vmem:[%s677_s26 + $0x18] sm:$0xff] %vm440_vm1, %v435_v38 }
 0x165   : > { %443 = vst.msk [vmem:[%s677_s26 + $0x10] sm:$0xff] %vm440_vm1, %v434_v41  ;;  %v567_v42 = vpop.f32.mrb[4].mxu0  ;;  %v583_v43 = vpop.f32.mrb[4].mxu1 }
 0x166   : > { %v437_v44 = vmax.f32 %v567_v42, %v583_v43  ;;  %v305_v45 = vpop.f32.mrb[5].mxu0  ;;  %v413_v46 = vpop.f32.mrb[5].mxu1 }
 0x167   : > { %v436_v47 = vmax.f32 %v305_v45, %v413_v46 }
 0x168   : > { %446 = vst.msk [vmem:[%s677_s26 + $0x28] sm:$0xff] %vm440_vm1, %v437_v44 }
 0x169   : > { %445 = vst.msk [vmem:[%s677_s26 + $0x20] sm:$0xff] %vm440_vm1, %v436_v47  ;;  %v570_v48 = vpop.f32.mrb[6].mxu0  ;;  %v586_v49 = vpop.f32.mrb[6].mxu1 }
 0x16a   : > { %v439_v50 = vmax.f32 %v570_v48, %v586_v49  ;;  %v315_v51 = vpop.f32.mrb[7].mxu0  ;;  %v423_v52 = vpop.f32.mrb[7].mxu1 }
 0x16b   : > { %v438_v53 = vmax.f32 %v315_v51, %v423_v52 }
 0x16c   : > { %448 = vst.msk [vmem:[%s677_s26 + $0x38] sm:$0xff] %vm440_vm1, %v439_v50 }
 0x16d   : > { %447 = vst.msk [vmem:[%s677_s26 + $0x30] sm:$0xff] %vm440_vm1, %v438_v53 }
 0x16e PF: > { %s12_s9 = sadd.s32 1, %s610_s9  }
 0x16f   : > { %p9_p4 = scmp.ge.s32.totalorder %s12_s9, 4  }
 0x171   :  { %11 = sbr.rel (!%p9_p4) target bundleno = 1 (0x1), region = 59 }

// kernel: _lambda_.7
= control target key start
LH: loop header
LB: loop body
LE: loop exit
PB: predicated region body
PF: predicated region fallthrough
CT: control target
= control target key end

     0   :  { %s611_s9 = smov 0   ;;  %s675_s0 = inlined_call_operand.vmem [shape: f32[2,64,16], index: 0, kind: input, shape index: {}]   ;;  %s676_s1 = inlined_call_operand.vmem [shape: f32[2,8,4], index: 1, kind: input, shape index: {}]   ;;  %s677_s2 = inlined_call_operand.vmem [shape: f32[2,64,4], index: 2, kind: output, shape index: {}]  }
   0x1 LB: > { %s502_s10 = sadd.s32 4294967295, %s593_s9   ;;  %p506_p0 = scmp.ge.s32.totalorder %s593_s9, 1  ;;  %s593_s9 = sphi %s611_s9, %s12_s9  }
   0x2   : > { %p112_p1 = scmp.lt.s32.totalorder %s593_s9, 3 }
   0x4   : > { %p113_p2 = pnand %p506_p0, %p112_p1 }
   0x5   : > { %p134_p3 = scmp.lt.s32.totalorder (!%p113_p2), %s502_s10, 1  ;;  %v192_v0 = vld [vmem:[%s676_s1] sm:$0xff] (!%p113_p2)  ;;  %v519_v1 = vld [vmem:[%s676_s1 + $0x8] sm:$0xff] (!%p113_p2)  ;;  %s595_s19 = smov (!%p113_p2), 120   ;;  %vm193_vm0 = vcmask (!%p113_p2), 64512   ;;  %vm438_vm1 = vcmask (!%p113_p2), 31744  }
   0x6   : > { %116 = sbr.rel (%p113_p2) target bundleno = 366 (0x16e), region = 28  ;;  %550 = vmatprep.subr.mxu0 (!%p113_p2), %v192_v0  ;;  %564 = vmatprep.subr.mxu1 (!%p113_p2), %v519_v1 }
   0x7   : > { %551 = vmatpush3.msra.mxu0 (!%p113_p2), %v192_v0  ;;  %565 = vmatpush3.msra.mxu1 (!%p113_p2), %v519_v1 }
   0xd   : > { %s679_s10 = smov (!%p134_p3, %s502_s10), 1 }
   0xe   : > { %s530_s15 = sshll.u32 %s679_s10, 6 }
   0xf   : > { %s138_s18 = scalar_lea.vmem %s675_s0, %s530_s15  ;;  %s654_s22 = scalar_lea.vmem %s677_s2, %s530_s15 }
  0x10   : > { %v144_v2 = vld [vmem:[%s138_s18] sm:$0xff]  ;;  %v146_v3 = vld [vmem:[%s138_s18 + $0x10] sm:$0xff]  ;;  %v145_v4 = vld [vmem:[%s138_s18 + $0x8] sm:$0xff] }
  0x11   : > { %160 = vrot.lane.b32.xlu0 %v144_v2, %s595_s19  ;;  %164 = vrot.lane.b32.xlu1 %v146_v3, %s595_s19  ;;  %v147_v5 = vld [vmem:[%s138_s18 + $0x18] sm:$0xff]  ;;  %v148_v6 = vld [vmem:[%s138_s18 + $0x20] sm:$0xff] }
  0x12   : > { %v149_v7 = vld [vmem:[%s138_s18 + $0x28] sm:$0xff]  ;;  %v150_v8 = vld [vmem:[%s138_s18 + $0x30] sm:$0xff]  ;;  %v151_v9 = vld [vmem:[%s138_s18 + $0x38] sm:$0xff] }
  0x15   : > { %162 = vrot.lane.b32.xlu0 %v145_v4, %s595_s19  ;;  %166 = vrot.lane.b32.xlu1 %v147_v5, %s595_s19 }
  0x19   : > { %168 = vrot.lane.b32.xlu0 %v148_v6, %s595_s19  ;;  %170 = vrot.lane.b32.xlu1 %v149_v7, %s595_s19 }
  0x1d   : > { %172 = vrot.lane.b32.xlu0 %v150_v8, %s595_s19  ;;  %174 = vrot.lane.b32.xlu1 %v151_v9, %s595_s19 }
  0x83   : > { %v161_v10 = vpop.permute.xlu0 %160  ;;  %v165_v11 = vpop.permute.xlu1 %164 }
  0x84   : > { %v184_v12 = vmax.f32 %v144_v2, %v161_v10  ;;  %v186_v13 = vmax.f32 %v146_v3, %v165_v11 }
  0x86   : > { %552 = vmatprep.mubr.msk.f32.mxu0 %vm193_vm0, %v184_v12  ;;  %566 = vmatprep.mubr.msk.f32.mxu1 %vm193_vm0, %v184_v12 }
  0x87   : > { %v163_v14 = vpop.permute.xlu0 %162  ;;  %v167_v15 = vpop.permute.xlu1 %166 }
  0x88   : > { %v185_v16 = vmax.f32 %v145_v4, %v163_v14  ;;  %v187_v17 = vmax.f32 %v147_v5, %v167_v15 }
  0x8a   : > { %553 = vmatmul.mubr.msk.f32.vlgmr.msra.gmra.mrb[0].mxu0 %vm193_vm0, %v185_v16  ;;  %567 = vmatmul.mubr.msk.f32.vlgmr.msra.gmra.mrb[0].mxu1 %vm193_vm0, %v185_v16 }
  0x8b   : > { %555 = vmatprep.mubr.msk.f32.mxu0 %vm193_vm0, %v186_v13  ;;  %569 = vmatprep.mubr.msk.f32.mxu1 %vm193_vm0, %v186_v13  ;;  %v169_v18 = vpop.permute.xlu0 %168  ;;  %v171_v19 = vpop.permute.xlu1 %170 }
  0x8c   : > { %v188_v20 = vmax.f32 %v148_v6, %v169_v18  ;;  %v189_v21 = vmax.f32 %v149_v7, %v171_v19 }
  0x8e   : > { %556 = vmatmul.mubr.msk.f32.gmra.mrb[2].mxu0 %vm193_vm0, %v187_v17  ;;  %570 = vmatmul.mubr.msk.f32.gmra.mrb[2].mxu1 %vm193_vm0, %v187_v17 }
  0x8f   : > { %558 = vmatprep.mubr.msk.f32.mxu0 %vm193_vm0, %v188_v20  ;;  %572 = vmatprep.mubr.msk.f32.mxu1 %vm193_vm0, %v188_v20  ;;  %v173_v22 = vpop.permute.xlu0 %172  ;;  %v175_v23 = vpop.permute.xlu1 %174 }
  0x90   : > { %v190_v24 = vmax.f32 %v150_v8, %v173_v22  ;;  %v191_v25 = vmax.f32 %v151_v9, %v175_v23 }
  0x92   : > { %559 = vmatmul.mubr.msk.f32.gmra.mrb[4].mxu0 %vm193_vm0, %v189_v21  ;;  %573 = vmatmul.mubr.msk.f32.gmra.mrb[4].mxu1 %vm193_vm0, %v189_v21 }
  0x93   : > { %561 = vmatprep.mubr.msk.f32.mxu0 %vm193_vm0, %v190_v24  ;;  %575 = vmatprep.mubr.msk.f32.mxu1 %vm193_vm0, %v190_v24 }
  0x96   : > { %562 = vmatmul.mubr.msk.f32.gmra.mrb[6].mxu0 %vm193_vm0, %v191_v25  ;;  %576 = vmatmul.mubr.msk.f32.gmra.mrb[6].mxu1 %vm193_vm0, %v191_v25 }
 0x15d   : > { %v554_v26 = vpop.f32.mrb[0].mxu0  ;;  %v568_v27 = vpop.f32.mrb[0].mxu1 }
 0x15e   : > { %v431_v28 = vmax.f32 %v554_v26, %v568_v27  ;;  %v284_v29 = vpop.f32.mrb[1].mxu0  ;;  %v391_v30 = vpop.f32.mrb[1].mxu1 }
 0x15f   : > { %v430_v31 = vmax.f32 %v284_v29, %v391_v30 }
 0x160   : > { %440 = vst.msk [vmem:[%s654_s22 + $0x8] sm:$0xff] %vm438_vm1, %v431_v28 }
 0x161   : > { %439 = vst.msk [vmem:[%s654_s22] sm:$0xff] %vm438_vm1, %v430_v31  ;;  %v557_v32 = vpop.f32.mrb[2].mxu0  ;;  %v571_v33 = vpop.f32.mrb[2].mxu1 }
 0x162   : > { %v433_v34 = vmax.f32 %v557_v32, %v571_v33  ;;  %v294_v35 = vpop.f32.mrb[3].mxu0  ;;  %v401_v36 = vpop.f32.mrb[3].mxu1 }
 0x163   : > { %v432_v37 = vmax.f32 %v294_v35, %v401_v36 }
 0x164   : > { %442 = vst.msk [vmem:[%s654_s22 + $0x18] sm:$0xff] %vm438_vm1, %v433_v34 }
 0x165   : > { %441 = vst.msk [vmem:[%s654_s22 + $0x10] sm:$0xff] %vm438_vm1, %v432_v37  ;;  %v560_v38 = vpop.f32.mrb[4].mxu0  ;;  %v574_v39 = vpop.f32.mrb[4].mxu1 }
 0x166   : > { %v435_v40 = vmax.f32 %v560_v38, %v574_v39  ;;  %v304_v41 = vpop.f32.mrb[5].mxu0  ;;  %v411_v42 = vpop.f32.mrb[5].mxu1 }
 0x167   : > { %v434_v43 = vmax.f32 %v304_v41, %v411_v42 }
 0x168   : > { %444 = vst.msk [vmem:[%s654_s22 + $0x28] sm:$0xff] %vm438_vm1, %v435_v40 }
 0x169   : > { %443 = vst.msk [vmem:[%s654_s22 + $0x20] sm:$0xff] %vm438_vm1, %v434_v43  ;;  %v563_v44 = vpop.f32.mrb[6].mxu0  ;;  %v577_v45 = vpop.f32.mrb[6].mxu1 }
 0x16a   : > { %v437_v46 = vmax.f32 %v563_v44, %v577_v45  ;;  %v314_v47 = vpop.f32.mrb[7].mxu0  ;;  %v421_v48 = vpop.f32.mrb[7].mxu1 }
 0x16b   : > { %v436_v49 = vmax.f32 %v314_v47, %v421_v48 }
 0x16c   : > { %446 = vst.msk [vmem:[%s654_s22 + $0x38] sm:$0xff] %vm438_vm1, %v437_v46 }
 0x16d   : > { %445 = vst.msk [vmem:[%s654_s22 + $0x30] sm:$0xff] %vm438_vm1, %v436_v49 }
 0x16e PF: > { %s12_s9 = sadd.s32 1, %s593_s9  }
 0x16f   : > { %p9_p4 = scmp.ge.s32.totalorder %s12_s9, 4  }
 0x171   :  { %11 = sbr.rel (!%p9_p4) target bundleno = 1 (0x1), region = 59 }

</bundles_post_ra>
